<compile_context>
chip_gen: v7x
topology: tpu7x:2x2x1
jax: 0.10.0
libtpu: 0.0.40
codegen_flags: <defaults>
</compile_context>

<pallas_src>
import jax
import jax.numpy as jnp
from jax.experimental import pallas as pl
from jax.experimental.pallas import tpu as pltpu

# ---- module hyper-parameters (small, self-consistent "args") -----------------
INPUT_SIZE = 32
ENCODER_SIZES = (64, 32)
DECODER_SIZES = (32,)
OUTPUT_SIZE = 16


def _mlp_kernel(x_ref,
                w0_ref, b0_ref,
                w1_ref, b1_ref,
                w2_ref, b2_ref,
                w3_ref, b3_ref,
                o_ref):
    """Fused 4-layer MLP: h = relu(h @ W + b), ReLU after every layer (f32)."""
    h = x_ref[...]
    for w_ref, b_ref in ((w0_ref, b0_ref),
                         (w1_ref, b1_ref),
                         (w2_ref, b2_ref),
                         (w3_ref, b3_ref)):
        h = jnp.dot(h, w_ref[...], preferred_element_type=jnp.float32)
        h = jnp.maximum(h + b_ref[...], 0.0)
    o_ref[...] = h.astype(o_ref.dtype)


def _tensorcores_per_chip():
    """Best-effort detection of TensorCores addressable by one pallas_call."""
    dev = jax.devices()[0]
    n = getattr(dev, "num_cores", None)
    if isinstance(n, int) and 1 <= n <= 8:
        return n
    kind = str(getattr(dev, "device_kind", "")).lower()
    # Dual-TensorCore (megacore-style) chips: v4, v5p, v7x.
    if any(tag in kind for tag in ("v4", "v5p", "v7")):
        return 2
    # v5e / v6e (and safe fallback): single TensorCore -> single grid step.
    return 1


def contrastive_learner_forward(x, params):
    """x: (B, INPUT_SIZE) f32.  params: [(W, b)] with W:(in,out) f32, b:(1,out) f32."""
    B, in_features = x.shape
    assert in_features == INPUT_SIZE

    # One grid step per TensorCore; never shard below 8-row (sublane) tiles.
    n_steps = max(1, min(_tensorcores_per_chip(), max(1, B // 8)))
    tile = -(-B // n_steps)            # ceil-divide batch across cores
    tile = ((tile + 7) // 8) * 8       # round up to sublane multiple
    b_pad = tile * n_steps
    x_p = jnp.pad(x, ((0, b_pad - B), (0, 0))) if b_pad != B else x

    flat = []
    in_specs = [pl.BlockSpec((tile, INPUT_SIZE), lambda i: (i, 0))]
    flops = 0
    bytes_accessed = x_p.size * 4 + b_pad * OUTPUT_SIZE * 4
    for (w, b) in params:
        flat.extend([w, b])
        in_specs.append(pl.BlockSpec(w.shape, lambda i: (0, 0)))  # resident weights
        in_specs.append(pl.BlockSpec(b.shape, lambda i: (0, 0)))
        flops += 2 * b_pad * w.shape[0] * w.shape[1]
        bytes_accessed += (w.size + b.size) * 4

    out_spec = pl.BlockSpec((tile, OUTPUT_SIZE), lambda i: (i, 0))

    out = pl.pallas_call(
        _mlp_kernel,
        out_shape=jax.ShapeDtypeStruct((b_pad, OUTPUT_SIZE), jnp.float32),
        grid_spec=pltpu.PrefetchScalarGridSpec(
            num_scalar_prefetch=0,
            grid=(n_steps,),
            in_specs=in_specs,
            out_specs=out_spec,
        ),
        compiler_params=pltpu.CompilerParams(
            dimension_semantics=("parallel",),
        ),
        cost_estimate=pl.CostEstimate(
            flops=flops, transcendentals=0, bytes_accessed=bytes_accessed),
    )(x_p, *flat)

    return out[:B] if b_pad != B else out


def init_params(key):
    """Deterministic init matching the module's layer shapes (PyTorch-style scale)."""
    dims = [INPUT_SIZE, *ENCODER_SIZES, *DECODER_SIZES, OUTPUT_SIZE]
    params = []
    for i in range(len(dims) - 1):
        key, kw, kb = jax.random.split(key, 3)
        bound = 1.0 / (dims[i] ** 0.5)
        w = jax.random.uniform(kw, (dims[i], dims[i + 1]), jnp.float32, -bound, bound)
        b = jax.random.uniform(kb, (1, dims[i + 1]), jnp.float32, -bound, bound)
        params.append((w, b))
    return params


def reference_forward_f32(x, params):
    """Pure f32 reference of the original PyTorch forward (Linear + ReLU chain)."""
    h = x
    for (w, b) in params:
        h = jnp.maximum(
            jnp.dot(h, w, precision=jax.lax.Precision.HIGHEST) + b, 0.0)
    return h


if __name__ == "__main__":
    key = jax.random.PRNGKey(0)
    key, kx = jax.random.split(key)
    BATCH = 512
    x = jax.random.normal(kx, (BATCH, INPUT_SIZE), jnp.float32)
    params = init_params(key)

    out = jax.block_until_ready(contrastive_learner_forward(x, params))
    assert out.shape == (BATCH, OUTPUT_SIZE)

    ref = reference_forward_f32(x, params)
    assert jnp.allclose(out, ref, atol=2e-2, rtol=2e-2)

    # Also exercise a non-aligned batch (padded last tile path).
    out_odd = jax.block_until_ready(contrastive_learner_forward(x[:37], params))
    assert out_odd.shape == (37, OUTPUT_SIZE)
    assert jnp.allclose(out_odd, ref[:37], atol=2e-2, rtol=2e-2)

    print("KERNEL_OK")
</pallas_src>

<mosaic_0001>
module attributes {stable_mosaic.version = 11 : i64} {
  func.func @_mlp_kernel(%arg0: i32, %arg1: memref<512x32xf32, #tpu.memory_space<vmem>>, %arg2: memref<32x64xf32, #tpu.memory_space<vmem>>, %arg3: memref<1x64xf32, #tpu.memory_space<vmem>>, %arg4: memref<64x32xf32, #tpu.memory_space<vmem>>, %arg5: memref<1x32xf32, #tpu.memory_space<vmem>>, %arg6: memref<32x32xf32, #tpu.memory_space<vmem>>, %arg7: memref<1x32xf32, #tpu.memory_space<vmem>>, %arg8: memref<32x16xf32, #tpu.memory_space<vmem>>, %arg9: memref<1x16xf32, #tpu.memory_space<vmem>>, %arg10: memref<512x16xf32, #tpu.memory_space<vmem>>) attributes {dimension_semantics = [#tpu.dimension_semantics<parallel>], iteration_bounds = array<i64: 1>, scalar_prefetch = 0 : i64, scratch_operands = 0 : i64, tpu.core_type = #tpu.core_type<tc>, window_params = [{transform_indices = @transform_0, window_bounds = array<i64: 512, 32>}, {pipeline_mode = #tpu.pipeline_mode<synchronous>, transform_indices = @transform_1, window_bounds = array<i64: 32, 64>}, {pipeline_mode = #tpu.pipeline_mode<synchronous>, transform_indices = @transform_2, window_bounds = array<i64: 1, 64>}, {pipeline_mode = #tpu.pipeline_mode<synchronous>, transform_indices = @transform_3, window_bounds = array<i64: 64, 32>}, {pipeline_mode = #tpu.pipeline_mode<synchronous>, transform_indices = @transform_4, window_bounds = array<i64: 1, 32>}, {pipeline_mode = #tpu.pipeline_mode<synchronous>, transform_indices = @transform_5, window_bounds = array<i64: 32, 32>}, {pipeline_mode = #tpu.pipeline_mode<synchronous>, transform_indices = @transform_6, window_bounds = array<i64: 1, 32>}, {pipeline_mode = #tpu.pipeline_mode<synchronous>, transform_indices = @transform_7, window_bounds = array<i64: 32, 16>}, {pipeline_mode = #tpu.pipeline_mode<synchronous>, transform_indices = @transform_8, window_bounds = array<i64: 1, 16>}, {transform_indices = @transform_9, window_bounds = array<i64: 512, 16>}]} {
    %c0 = arith.constant 0 : index
    %c0_0 = arith.constant 0 : index
    %0 = vector.load %arg1[%c0, %c0_0] : memref<512x32xf32, #tpu.memory_space<vmem>>, vector<512x32xf32>
    %c0_1 = arith.constant 0 : index
    %c0_2 = arith.constant 0 : index
    %1 = vector.load %arg2[%c0_1, %c0_2] : memref<32x64xf32, #tpu.memory_space<vmem>>, vector<32x64xf32>
    %cst = arith.constant dense<0.000000e+00> : vector<512x64xf32>
    %2 = tpu.matmul %0, %1, %cst {dimension_numbers = #tpu.dot_dimension_numbers<[1], [0], [0], [1], [0, 0, 1, 1], [], []>} : vector<512x32xf32>, vector<32x64xf32>, vector<512x64xf32> -> vector<512x64xf32>
    %c0_3 = arith.constant 0 : index
    %c0_4 = arith.constant 0 : index
    %3 = vector.load %arg3[%c0_3, %c0_4] : memref<1x64xf32, #tpu.memory_space<vmem>>, vector<1x64xf32>
    %4 = vector.broadcast %3 : vector<1x64xf32> to vector<512x64xf32>
    %5 = arith.addf %2, %4 : vector<512x64xf32>
    %cst_5 = arith.constant 0.000000e+00 : f32
    %6 = vector.broadcast %cst_5 : f32 to vector<512x64xf32>
    %7 = arith.maximumf %5, %6 : vector<512x64xf32>
    %c0_6 = arith.constant 0 : index
    %c0_7 = arith.constant 0 : index
    %8 = vector.load %arg4[%c0_6, %c0_7] : memref<64x32xf32, #tpu.memory_space<vmem>>, vector<64x32xf32>
    %cst_8 = arith.constant dense<0.000000e+00> : vector<512x32xf32>
    %9 = tpu.matmul %7, %8, %cst_8 {dimension_numbers = #tpu.dot_dimension_numbers<[1], [0], [0], [1], [0, 0, 1, 1], [], []>} : vector<512x64xf32>, vector<64x32xf32>, vector<512x32xf32> -> vector<512x32xf32>
    %c0_9 = arith.constant 0 : index
    %c0_10 = arith.constant 0 : index
    %10 = vector.load %arg5[%c0_9, %c0_10] : memref<1x32xf32, #tpu.memory_space<vmem>>, vector<1x32xf32>
    %11 = vector.broadcast %10 : vector<1x32xf32> to vector<512x32xf32>
    %12 = arith.addf %9, %11 : vector<512x32xf32>
    %cst_11 = arith.constant 0.000000e+00 : f32
    %13 = vector.broadcast %cst_11 : f32 to vector<512x32xf32>
    %14 = arith.maximumf %12, %13 : vector<512x32xf32>
    %c0_12 = arith.constant 0 : index
    %c0_13 = arith.constant 0 : index
    %15 = vector.load %arg6[%c0_12, %c0_13] : memref<32x32xf32, #tpu.memory_space<vmem>>, vector<32x32xf32>
    %cst_14 = arith.constant dense<0.000000e+00> : vector<512x32xf32>
    %16 = tpu.matmul %14, %15, %cst_14 {dimension_numbers = #tpu.dot_dimension_numbers<[1], [0], [0], [1], [0, 0, 1, 1], [], []>} : vector<512x32xf32>, vector<32x32xf32>, vector<512x32xf32> -> vector<512x32xf32>
    %c0_15 = arith.constant 0 : index
    %c0_16 = arith.constant 0 : index
    %17 = vector.load %arg7[%c0_15, %c0_16] : memref<1x32xf32, #tpu.memory_space<vmem>>, vector<1x32xf32>
    %18 = vector.broadcast %17 : vector<1x32xf32> to vector<512x32xf32>
    %19 = arith.addf %16, %18 : vector<512x32xf32>
    %cst_17 = arith.constant 0.000000e+00 : f32
    %20 = vector.broadcast %cst_17 : f32 to vector<512x32xf32>
    %21 = arith.maximumf %19, %20 : vector<512x32xf32>
    %c0_18 = arith.constant 0 : index
    %c0_19 = arith.constant 0 : index
    %22 = vector.load %arg8[%c0_18, %c0_19] : memref<32x16xf32, #tpu.memory_space<vmem>>, vector<32x16xf32>
    %cst_20 = arith.constant dense<0.000000e+00> : vector<512x16xf32>
    %23 = tpu.matmul %21, %22, %cst_20 {dimension_numbers = #tpu.dot_dimension_numbers<[1], [0], [0], [1], [0, 0, 1, 1], [], []>} : vector<512x32xf32>, vector<32x16xf32>, vector<512x16xf32> -> vector<512x16xf32>
    %c0_21 = arith.constant 0 : index
    %c0_22 = arith.constant 0 : index
    %24 = vector.load %arg9[%c0_21, %c0_22] : memref<1x16xf32, #tpu.memory_space<vmem>>, vector<1x16xf32>
    %25 = vector.broadcast %24 : vector<1x16xf32> to vector<512x16xf32>
    %26 = arith.addf %23, %25 : vector<512x16xf32>
    %cst_23 = arith.constant 0.000000e+00 : f32
    %27 = vector.broadcast %cst_23 : f32 to vector<512x16xf32>
    %28 = arith.maximumf %26, %27 : vector<512x16xf32>
    %c0_24 = arith.constant 0 : index
    %c0_25 = arith.constant 0 : index
    %29 = vector.load %arg10[%c0_24, %c0_25] : memref<512x16xf32, #tpu.memory_space<vmem>>, vector<512x16xf32>
    tpu.vector_store %arg10[%c0_24, %c0_25], %28 {strides = array<i32>} : memref<512x16xf32, #tpu.memory_space<vmem>>, vector<512x16xf32>,
    return
  }
  func.func @transform_0(%arg0: i32) -> (i32, i32) {
    %c0_i32 = arith.constant 0 : i32
    %c0_i32_0 = arith.constant 0 : i32
    return %arg0, %c0_i32 : i32, i32
  }
  func.func @transform_1(%arg0: i32) -> (i32, i32) {
    %c0_i32 = arith.constant 0 : i32
    %c0_i32_0 = arith.constant 0 : i32
    %c0_i32_1 = arith.constant 0 : i32
    return %c0_i32, %c0_i32_0 : i32, i32
  }
  func.func @transform_2(%arg0: i32) -> (i32, i32) {
    %c0_i32 = arith.constant 0 : i32
    %c0_i32_0 = arith.constant 0 : i32
    %c0_i32_1 = arith.constant 0 : i32
    return %c0_i32, %c0_i32_0 : i32, i32
  }
  func.func @transform_3(%arg0: i32) -> (i32, i32) {
    %c0_i32 = arith.constant 0 : i32
    %c0_i32_0 = arith.constant 0 : i32
    %c0_i32_1 = arith.constant 0 : i32
    return %c0_i32, %c0_i32_0 : i32, i32
  }
  func.func @transform_4(%arg0: i32) -> (i32, i32) {
    %c0_i32 = arith.constant 0 : i32
    %c0_i32_0 = arith.constant 0 : i32
    %c0_i32_1 = arith.constant 0 : i32
    return %c0_i32, %c0_i32_0 : i32, i32
  }
  func.func @transform_5(%arg0: i32) -> (i32, i32) {
    %c0_i32 = arith.constant 0 : i32
    %c0_i32_0 = arith.constant 0 : i32
    %c0_i32_1 = arith.constant 0 : i32
    return %c0_i32, %c0_i32_0 : i32, i32
  }
  func.func @transform_6(%arg0: i32) -> (i32, i32) {
    %c0_i32 = arith.constant 0 : i32
    %c0_i32_0 = arith.constant 0 : i32
    %c0_i32_1 = arith.constant 0 : i32
    return %c0_i32, %c0_i32_0 : i32, i32
  }
  func.func @transform_7(%arg0: i32) -> (i32, i32) {
    %c0_i32 = arith.constant 0 : i32
    %c0_i32_0 = arith.constant 0 : i32
    %c0_i32_1 = arith.constant 0 : i32
    return %c0_i32, %c0_i32_0 : i32, i32
  }
  func.func @transform_8(%arg0: i32) -> (i32, i32) {
    %c0_i32 = arith.constant 0 : i32
    %c0_i32_0 = arith.constant 0 : i32
    %c0_i32_1 = arith.constant 0 : i32
    return %c0_i32, %c0_i32_0 : i32, i32
  }
  func.func @transform_9(%arg0: i32) -> (i32, i32) {
    %c0_i32 = arith.constant 0 : i32
    %c0_i32_0 = arith.constant 0 : i32
    return %arg0, %c0_i32 : i32, i32
  }
}

</mosaic_0001>

<bundles_post_ra>
// kernel: tpu_custom_call.1
= control target key start
LH: loop header
LB: loop body
LE: loop exit
PB: predicated region body
PF: predicated region fallthrough
CT: control target
= control target key end

     0   :  { %vm107_vm0 = vcmask 261120   ;;  %vm764_vm1 = vcmask 523264   ;;  %vm2710_vm2 = vcmask 130048   ;;  %s4873_s1 = inlined_call_operand.vmem [shape: f32[32,64], index: 1, kind: input, shape index: {}]   ;;  %s4874_s0 = inlined_call_operand.vmem [shape: f32[512,32], index: 0, kind: input, shape index: {}]   ;;  %s4875_s3 = inlined_call_operand.vmem [shape: f32[64,32], index: 3, kind: input, shape index: {}]   ;;  %s4876_s5 = inlined_call_operand.vmem [shape: f32[32,32], index: 5, kind: input, shape index: {}]   ;;  %s4877_s2 = inlined_call_operand.vmem [shape: f32[1,64], index: 2, kind: input, shape index: {}]   ;;  %s4878_s7 = inlined_call_operand.vmem [shape: f32[32,16], index: 7, kind: input, shape index: {}]   ;;  %s4879_s4 = inlined_call_operand.vmem [shape: f32[1,32], index: 4, kind: input, shape index: {}]   ;;  %s4880_s6 = inlined_call_operand.vmem [shape: f32[1,32], index: 6, kind: input, shape index: {}]   ;;  %s4881_s8 = inlined_call_operand.vmem [shape: f32[1,16], index: 8, kind: input, shape index: {}]   ;;  %s4882_s9 = inlined_call_operand.vmem [shape: f32[512,16], index: 9, kind: output, shape index: {}]  }
   0x1   :  { %v96_v0 = vld [vmem:[%s4873_s1] sm:$0xff]  ;;  %v97_v1 = vld [vmem:[%s4873_s1 + $0x8] sm:$0xff]  ;;  %v98_v2 = vld [vmem:[%s4873_s1 + $0x10] sm:$0xff] }
   0x2   :  { %v3739_v3 = vpack.c.bf16 %v97_v1, %v96_v0  ;;  %v99_v4 = vld [vmem:[%s4873_s1 + $0x18] sm:$0xff]  ;;  %v32_v5 = vld [vmem:[%s4874_s0] sm:$0xff]  ;;  %v33_v7 = vld [vmem:[%s4874_s0 + $0x8] sm:$0xff] }
   0x3   :  { %v3743_v6 = vpack.c.bf16 %v99_v4, %v98_v2  ;;  %3323 = vmatprep.mubr.msk.f32.mxu0 %vm107_vm0, %v32_v5  ;;  %v34_v8 = vld [vmem:[%s4874_s0 + $0x10] sm:$0xff]  ;;  %v35_v9 = vld [vmem:[%s4874_s0 + $0x18] sm:$0xff]  ;;  %v36_v10 = vld [vmem:[%s4874_s0 + $0x20] sm:$0xff] }
   0x4   :  { %3740 = vmatprep.subr.bf16.mxu0 %v3739_v3  ;;  %v37_v11 = vld [vmem:[%s4874_s0 + $0x28] sm:$0xff]  ;;  %v38_v12 = vld [vmem:[%s4874_s0 + $0x30] sm:$0xff]  ;;  %v39_v13 = vld [vmem:[%s4874_s0 + $0x38] sm:$0xff] }
   0x5   :  { %3742 = vmatpush3.bf16.msra.mxu0 %v3739_v3  ;;  %v40_v14 = vld [vmem:[%s4874_s0 + $0x40] sm:$0xff]  ;;  %v750_v16 = vld [vmem:[%s4875_s3 + $0x8] sm:$0xff]  ;;  %v751_v17 = vld [vmem:[%s4875_s3 + $0x10] sm:$0xff] }
   0x6   :  { %3744 = vmatprep.subr.bf16.mxu0 %v3743_v6  ;;  %v749_v15 = vld [vmem:[%s4875_s3] sm:$0xff]  ;;  %v752_v18 = vld [vmem:[%s4875_s3 + $0x18] sm:$0xff]  ;;  %v41_v19 = vld [vmem:[%s4874_s0 + $0x48] sm:$0xff] }
   0x7   :  { %v3747_v20 = vpack.c.bf16 %v750_v16, %v749_v15  ;;  %v3751_v21 = vpack.c.bf16 %v752_v18, %v751_v17  ;;  %v42_v22 = vld [vmem:[%s4874_s0 + $0x50] sm:$0xff]  ;;  %v753_v23 = vld [vmem:[%s4875_s3 + $0x20] sm:$0xff]  ;;  %v754_v24 = vld [vmem:[%s4875_s3 + $0x28] sm:$0xff] }
   0x8   :  { %v43_v25 = vld [vmem:[%s4874_s0 + $0x58] sm:$0xff]  ;;  %v3755_v26 = vpack.c.bf16 %v754_v24, %v753_v23  ;;  %v44_v27 = vld [vmem:[%s4874_s0 + $0x60] sm:$0xff]  ;;  %v45_v28 = vld [vmem:[%s4874_s0 + $0x68] sm:$0xff] }
   0x9   :  { %3746 = vmatpush3.bf16.msra.mxu0 %v3743_v6  ;;  %3748 = vmatprep.subr.bf16.mxu1 %v3747_v20  ;;  %v46_v29 = vld [vmem:[%s4874_s0 + $0x70] sm:$0xff]  ;;  %v47_v30 = vld [vmem:[%s4874_s0 + $0x78] sm:$0xff]  ;;  %v48_v31 = vld [vmem:[%s4874_s0 + $0x80] sm:$0xff] }
   0xa   :  { %3750 = vmatpush3.bf16.msra.mxu1 %v3747_v20  ;;  %v49_v32 = vld [vmem:[%s4874_s0 + $0x88] sm:$0xff]  ;;  %v50_v33 = vld [vmem:[%s4874_s0 + $0x90] sm:$0xff]  ;;  %v51_v34 = vld [vmem:[%s4874_s0 + $0x98] sm:$0xff] }
   0xb   :  { %3752 = vmatprep.subr.bf16.mxu1 %v3751_v21  ;;  %v52_v35 = vld [vmem:[%s4874_s0 + $0xa0] sm:$0xff]  ;;  %v53_v36 = vld [vmem:[%s4874_s0 + $0xa8] sm:$0xff]  ;;  %v54_v37 = vld [vmem:[%s4874_s0 + $0xb0] sm:$0xff] }
   0xc   :  { %3324 = vmatmul.mubr.msk.f32.vlgmr.msra.gmra.mrb[0].mxu0 %vm107_vm0, %v33_v7  ;;  %v55_v38 = vld [vmem:[%s4874_s0 + $0xb8] sm:$0xff]  ;;  %v56_v39 = vld [vmem:[%s4874_s0 + $0xc0] sm:$0xff]  ;;  %v57_v40 = vld [vmem:[%s4874_s0 + $0xc8] sm:$0xff] }
   0xd   :  { %3326 = vmatprep.mubr.msk.f32.mxu0 %vm107_vm0, %v34_v8  ;;  %v58_v41 = vld [vmem:[%s4874_s0 + $0xd0] sm:$0xff]  ;;  %v59_v42 = vld [vmem:[%s4874_s0 + $0xd8] sm:$0xff]  ;;  %v60_v43 = vld [vmem:[%s4874_s0 + $0xe0] sm:$0xff] }
   0xe   :  { %3754 = vmatpush3.bf16.msra.mxu1 %v3751_v21  ;;  %v61_v44 = vld [vmem:[%s4874_s0 + $0xe8] sm:$0xff]  ;;  %v62_v45 = vld [vmem:[%s4874_s0 + $0xf0] sm:$0xff]  ;;  %v63_v46 = vld [vmem:[%s4874_s0 + $0xf8] sm:$0xff] }
   0xf   :  { %3756 = vmatprep.subr.bf16.mxu1 %v3755_v26  ;;  %v64_v47 = vld [vmem:[%s4874_s0 + $0x100] sm:$0xff]  ;;  %v65_v48 = vld [vmem:[%s4874_s0 + $0x108] sm:$0xff]  ;;  %v66_v49 = vld [vmem:[%s4874_s0 + $0x110] sm:$0xff] }
  0x10   :  { %3327 = vmatmul.mubr.msk.f32.gmra.mrb[2].mxu0 %vm107_vm0, %v35_v9  ;;  %v67_v50 = vld [vmem:[%s4874_s0 + $0x118] sm:$0xff]  ;;  %v68_v51 = vld [vmem:[%s4874_s0 + $0x120] sm:$0xff]  ;;  %v69_v52 = vld [vmem:[%s4874_s0 + $0x128] sm:$0xff] }
  0x11   :  { %3329 = vmatprep.mubr.msk.f32.mxu0 %vm107_vm0, %v36_v10  ;;  %v70_v53 = vld [vmem:[%s4874_s0 + $0x130] sm:$0xff]  ;;  %v71_v54 = vld [vmem:[%s4874_s0 + $0x138] sm:$0xff]  ;;  %v72_v55 = vld [vmem:[%s4874_s0 + $0x140] sm:$0xff] }
  0x12   :  { %3758 = vmatpush3.bf16.msra.mxu1 %v3755_v26  ;;  %v73_v56 = vld [vmem:[%s4874_s0 + $0x148] sm:$0xff]  ;;  %v74_v57 = vld [vmem:[%s4874_s0 + $0x150] sm:$0xff]  ;;  %v75_v58 = vld [vmem:[%s4874_s0 + $0x158] sm:$0xff] }
  0x13   :  { %v76_v59 = vld [vmem:[%s4874_s0 + $0x160] sm:$0xff]  ;;  %v755_v60 = vld [vmem:[%s4875_s3 + $0x30] sm:$0xff]  ;;  %v756_v61 = vld [vmem:[%s4875_s3 + $0x38] sm:$0xff] }
  0x14   :  { %3330 = vmatmul.mubr.msk.f32.gmra.mrb[4].mxu0 %vm107_vm0, %v37_v11  ;;  %v3759_v62 = vpack.c.bf16 %v756_v61, %v755_v60  ;;  %v77_v63 = vld [vmem:[%s4874_s0 + $0x168] sm:$0xff]  ;;  %v78_v0 = vld [vmem:[%s4874_s0 + $0x170] sm:$0xff]  ;;  %v79_v1 = vld [vmem:[%s4874_s0 + $0x178] sm:$0xff] }
  0x15   :  { %3332 = vmatprep.mubr.msk.f32.mxu0 %vm107_vm0, %v38_v12  ;;  %v80_v2 = vld [vmem:[%s4874_s0 + $0x180] sm:$0xff]  ;;  %v81_v3 = vld [vmem:[%s4874_s0 + $0x188] sm:$0xff]  ;;  %v82_v4 = vld [vmem:[%s4874_s0 + $0x190] sm:$0xff] }
  0x16   :  { %3760 = vmatprep.subr.bf16.mxu1 %v3759_v62  ;;  %v83_v5 = vld [vmem:[%s4874_s0 + $0x198] sm:$0xff]  ;;  %v84_v6 = vld [vmem:[%s4874_s0 + $0x1a0] sm:$0xff]  ;;  %v85_v7 = vld [vmem:[%s4874_s0 + $0x1a8] sm:$0xff] }
  0x17   :  { %3762 = vmatpush3.bf16.msra.mxu1 %v3759_v62  ;;  %v86_v8 = vld [vmem:[%s4874_s0 + $0x1b0] sm:$0xff]  ;;  %v87_v9 = vld [vmem:[%s4874_s0 + $0x1b8] sm:$0xff]  ;;  %v88_v10 = vld [vmem:[%s4874_s0 + $0x1c0] sm:$0xff] }
  0x18   :  { %3333 = vmatmul.mubr.msk.f32.gmra.mrb[6].mxu0 %vm107_vm0, %v39_v13  ;;  %v89_v11 = vld [vmem:[%s4874_s0 + $0x1c8] sm:$0xff]  ;;  %v90_v12 = vld [vmem:[%s4874_s0 + $0x1d0] sm:$0xff]  ;;  %v91_v13 = vld [vmem:[%s4874_s0 + $0x1d8] sm:$0xff] }
  0x19   :  { %3335 = vmatprep.mubr.msk.f32.mxu0 %vm107_vm0, %v40_v14  ;;  %v92_v14 = vld [vmem:[%s4874_s0 + $0x1e0] sm:$0xff]  ;;  %v93_v15 = vld [vmem:[%s4874_s0 + $0x1e8] sm:$0xff]  ;;  %v94_v16 = vld [vmem:[%s4874_s0 + $0x1f0] sm:$0xff] }
  0x1a   :  { %v95_v17 = vld [vmem:[%s4874_s0 + $0x1f8] sm:$0xff]  ;;  %v1406_v18 = vld [vmem:[%s4876_s5] sm:$0xff]  ;;  %v1408_v26 = vld [vmem:[%s4876_s5 + $0x10] sm:$0xff] }
  0x1b   :  { %v4134_v21 = vld [vmem:[%s4877_s2] ss:$0 sm:$0xff] }
  0x1c   :  { %3336 = vmatmul.mubr.msk.f32.gmra.mrb[8].mxu0 %vm107_vm0, %v41_v19  ;;  %v1407_v19 = vld [vmem:[%s4876_s5 + $0x8] sm:$0xff] }
  0x1d   :  { %3338 = vmatprep.mubr.msk.f32.mxu0 %vm107_vm0, %v42_v22  ;;  %v3763_v20 = vpack.c.bf16 %v1407_v19, %v1406_v18 }
  0x1f   :  { %3764 = vmatprep.subr.bf16.mxu0 %v3763_v20 }
  0x20   :  { %3339 = vmatmul.mubr.msk.f32.gmra.mrb[10].mxu0 %vm107_vm0, %v43_v25 }
  0x21   :  { %3341 = vmatprep.mubr.msk.f32.mxu0 %vm107_vm0, %v44_v27  ;;  %3766 = vmatpush3.bf16.msra.mxu0 %v3763_v20  ;;  %v1409_v27 = vld [vmem:[%s4876_s5 + $0x18] sm:$0xff] }
  0x24   :  { %3342 = vmatmul.mubr.msk.f32.gmra.mrb[12].mxu0 %vm107_vm0, %v45_v28 }
  0x25   :  { %3344 = vmatprep.mubr.msk.f32.mxu0 %vm107_vm0, %v46_v29 }
  0x28   :  { %3345 = vmatmul.mubr.msk.f32.gmra.mrb[14].mxu0 %vm107_vm0, %v47_v30  ;;  %v3767_v30 = vpack.c.bf16 %v1409_v27, %v1408_v26 }
  0x29   :  { %3347 = vmatprep.mubr.msk.f32.mxu0 %vm107_vm0, %v48_v31 }
  0x2a   :  { %3768 = vmatprep.subr.bf16.mxu0 %v3767_v30 }
  0x2b   :  { %3770 = vmatpush3.bf16.msra.mxu0 %v3767_v30 }
  0x2c   :  { %3348 = vmatmul.mubr.msk.f32.gmra.mrb[16].mxu0 %vm107_vm0, %v49_v32 }
  0x2d   :  { %3350 = vmatprep.mubr.msk.f32.mxu0 %vm107_vm0, %v50_v33 }
  0x30   :  { %3351 = vmatmul.mubr.msk.f32.gmra.mrb[18].mxu0 %vm107_vm0, %v51_v34 }
  0x31   :  { %3353 = vmatprep.mubr.msk.f32.mxu0 %vm107_vm0, %v52_v35 }
  0x34   :  { %3354 = vmatmul.mubr.msk.f32.gmra.mrb[20].mxu0 %vm107_vm0, %v53_v36 }
  0x35   :  { %3356 = vmatprep.mubr.msk.f32.mxu0 %vm107_vm0, %v54_v37 }
  0x38   :  { %3357 = vmatmul.mubr.msk.f32.gmra.mrb[22].mxu0 %vm107_vm0, %v55_v38 }
  0x39   :  { %3359 = vmatprep.mubr.msk.f32.mxu0 %vm107_vm0, %v56_v39 }
  0x3c   :  { %3360 = vmatmul.mubr.msk.f32.gmra.mrb[24].mxu0 %vm107_vm0, %v57_v40 }
  0x3d   :  { %3362 = vmatprep.mubr.msk.f32.mxu0 %vm107_vm0, %v58_v41 }
  0x40   :  { %3363 = vmatmul.mubr.msk.f32.gmra.mrb[26].mxu0 %vm107_vm0, %v59_v42 }
  0x41   :  { %3365 = vmatprep.mubr.msk.f32.mxu0 %vm107_vm0, %v60_v43 }
  0x44   :  { %3366 = vmatmul.mubr.msk.f32.gmra.mrb[28].mxu0 %vm107_vm0, %v61_v44 }
  0x45   :  { %3368 = vmatprep.mubr.msk.f32.mxu0 %vm107_vm0, %v62_v45 }
  0x48   :  { %3369 = vmatmul.mubr.msk.f32.gmra.mrb[30].mxu0 %vm107_vm0, %v63_v46 }
  0x49   :  { %3371 = vmatprep.mubr.msk.f32.mxu0 %vm107_vm0, %v64_v47 }
  0x4c   :  { %3372 = vmatmul.mubr.msk.f32.gmra.mrb[32].mxu0 %vm107_vm0, %v65_v48 }
  0x4d   :  { %3374 = vmatprep.mubr.msk.f32.mxu0 %vm107_vm0, %v66_v49 }
  0x50   :  { %3375 = vmatmul.mubr.msk.f32.gmra.mrb[34].mxu0 %vm107_vm0, %v67_v50 }
  0x51   :  { %3377 = vmatprep.mubr.msk.f32.mxu0 %vm107_vm0, %v68_v51 }
  0x54   :  { %3378 = vmatmul.mubr.msk.f32.gmra.mrb[36].mxu0 %vm107_vm0, %v69_v52 }
  0x55   :  { %3380 = vmatprep.mubr.msk.f32.mxu0 %vm107_vm0, %v70_v53 }
  0x58   :  { %3381 = vmatmul.mubr.msk.f32.gmra.mrb[38].mxu0 %vm107_vm0, %v71_v54 }
  0x59   :  { %3383 = vmatprep.mubr.msk.f32.mxu0 %vm107_vm0, %v72_v55 }
  0x5c   :  { %3384 = vmatmul.mubr.msk.f32.gmra.mrb[40].mxu0 %vm107_vm0, %v73_v56 }
  0x5d   :  { %3386 = vmatprep.mubr.msk.f32.mxu0 %vm107_vm0, %v74_v57 }
  0x60   :  { %3387 = vmatmul.mubr.msk.f32.gmra.mrb[42].mxu0 %vm107_vm0, %v75_v58 }
  0x61   :  { %3389 = vmatprep.mubr.msk.f32.mxu0 %vm107_vm0, %v76_v59 }
  0x64   :  { %3390 = vmatmul.mubr.msk.f32.gmra.mrb[44].mxu0 %vm107_vm0, %v77_v63 }
  0x65   :  { %3392 = vmatprep.mubr.msk.f32.mxu0 %vm107_vm0, %v78_v0 }
  0x68   :  { %3393 = vmatmul.mubr.msk.f32.gmra.mrb[46].mxu0 %vm107_vm0, %v79_v1 }
  0x69   :  { %3395 = vmatprep.mubr.msk.f32.mxu0 %vm107_vm0, %v80_v2 }
  0x6c   :  { %3396 = vmatmul.mubr.msk.f32.gmra.mrb[48].mxu0 %vm107_vm0, %v81_v3 }
  0x6d   :  { %3398 = vmatprep.mubr.msk.f32.mxu0 %vm107_vm0, %v82_v4 }
  0x70   :  { %3399 = vmatmul.mubr.msk.f32.gmra.mrb[50].mxu0 %vm107_vm0, %v83_v5 }
  0x71   :  { %3401 = vmatprep.mubr.msk.f32.mxu0 %vm107_vm0, %v84_v6 }
  0x74   :  { %3402 = vmatmul.mubr.msk.f32.gmra.mrb[52].mxu0 %vm107_vm0, %v85_v7 }
  0x75   :  { %3404 = vmatprep.mubr.msk.f32.mxu0 %vm107_vm0, %v86_v8 }
  0x78   :  { %3405 = vmatmul.mubr.msk.f32.gmra.mrb[54].mxu0 %vm107_vm0, %v87_v9 }
  0x79   :  { %3407 = vmatprep.mubr.msk.f32.mxu0 %vm107_vm0, %v88_v10 }
  0x7c   :  { %3408 = vmatmul.mubr.msk.f32.gmra.mrb[56].mxu0 %vm107_vm0, %v89_v11 }
  0x7d   :  { %3410 = vmatprep.mubr.msk.f32.mxu0 %vm107_vm0, %v90_v12 }
  0x80   :  { %3411 = vmatmul.mubr.msk.f32.gmra.mrb[58].mxu0 %vm107_vm0, %v91_v13 }
  0x81   :  { %3413 = vmatprep.mubr.msk.f32.mxu0 %vm107_vm0, %v92_v14 }
  0x84   :  { %3414 = vmatmul.mubr.msk.f32.gmra.mrb[60].mxu0 %vm107_vm0, %v93_v15 }
  0x85   :  { %3416 = vmatprep.mubr.msk.f32.mxu0 %vm107_vm0, %v94_v16 }
  0x88   :  { %3417 = vmatmul.mubr.msk.f32.gmra.mrb[62].mxu0 %vm107_vm0, %v95_v17 }
  0xdf   :  { %v3325_v22 = vpop.f32.mrb[0].mxu0 }
  0xe0   :  { %v372_v23 = vadd.f32 %v3325_v22, %v4134_v21  ;;  %v366_v24 = vpop.f32.mrb[1].mxu0 }
  0xe1   :  { %v367_v25 = vadd.f32 %v4134_v21, %v366_v24 }
  0xe2   :  { %v686_v31 = vmax.f32 %v372_v23, 0.0 }
  0xe3   :  { %v685_v28 = vmax.f32 %v367_v25, 0.0  ;;  %v3328_v29 = vpop.f32.mrb[2].mxu0 }
  0xe4   :  { %v382_v32 = vadd.f32 %v3328_v29, %v4134_v21  ;;  %v376_v33 = vpop.f32.mrb[3].mxu0 }
  0xe5   :  { %v377_v34 = vadd.f32 %v4134_v21, %v376_v33  ;;  %3435 = vmatprep.mubr.msk.f32.mxu1 %vm764_vm1, %v685_v28 }
  0xe6   :  { %3436 = vmatmul.mubr.msk.f32.vlgmr.msra.gmra.mrb[0].mxu1 %vm764_vm1, %v686_v31  ;;  %v688_v37 = vmax.f32 %v382_v32, 0.0 }
  0xe7   :  { %v687_v35 = vmax.f32 %v377_v34, 0.0  ;;  %v3331_v36 = vpop.f32.mrb[4].mxu0 }
  0xe8   :  { %v392_v38 = vadd.f32 %v3331_v36, %v4134_v21  ;;  %v386_v39 = vpop.f32.mrb[5].mxu0 }
  0xe9   :  { %v387_v40 = vadd.f32 %v4134_v21, %v386_v39  ;;  %3438 = vmatprep.mubr.msk.f32.mxu1 %vm764_vm1, %v687_v35 }
  0xea   :  { %3439 = vmatmul.mubr.msk.f32.gmra.mrb[2].mxu1 %vm764_vm1, %v688_v37  ;;  %v690_v43 = vmax.f32 %v392_v38, 0.0 }
  0xeb   :  { %v689_v41 = vmax.f32 %v387_v40, 0.0  ;;  %v3334_v42 = vpop.f32.mrb[6].mxu0 }
  0xec   :  { %v402_v44 = vadd.f32 %v3334_v42, %v4134_v21  ;;  %v396_v45 = vpop.f32.mrb[7].mxu0 }
  0xed   :  { %v397_v46 = vadd.f32 %v4134_v21, %v396_v45  ;;  %3441 = vmatprep.mubr.msk.f32.mxu1 %vm764_vm1, %v689_v41 }
  0xee   :  { %3442 = vmatmul.mubr.msk.f32.gmra.mrb[4].mxu1 %vm764_vm1, %v690_v43  ;;  %v692_v49 = vmax.f32 %v402_v44, 0.0 }
  0xef   :  { %v691_v47 = vmax.f32 %v397_v46, 0.0  ;;  %v3337_v48 = vpop.f32.mrb[8].mxu0 }
  0xf0   :  { %v412_v50 = vadd.f32 %v3337_v48, %v4134_v21  ;;  %v406_v51 = vpop.f32.mrb[9].mxu0 }
  0xf1   :  { %v407_v52 = vadd.f32 %v4134_v21, %v406_v51  ;;  %3444 = vmatprep.mubr.msk.f32.mxu1 %vm764_vm1, %v691_v47 }
  0xf2   :  { %3445 = vmatmul.mubr.msk.f32.gmra.mrb[6].mxu1 %vm764_vm1, %v692_v49  ;;  %v694_v55 = vmax.f32 %v412_v50, 0.0 }
  0xf3   :  { %v693_v53 = vmax.f32 %v407_v52, 0.0  ;;  %v3340_v54 = vpop.f32.mrb[10].mxu0 }
  0xf4   :  { %v422_v56 = vadd.f32 %v3340_v54, %v4134_v21  ;;  %v416_v57 = vpop.f32.mrb[11].mxu0 }
  0xf5   :  { %v417_v58 = vadd.f32 %v4134_v21, %v416_v57  ;;  %3447 = vmatprep.mubr.msk.f32.mxu1 %vm764_vm1, %v693_v53 }
  0xf6   :  { %3448 = vmatmul.mubr.msk.f32.gmra.mrb[8].mxu1 %vm764_vm1, %v694_v55  ;;  %v696_v61 = vmax.f32 %v422_v56, 0.0 }
  0xf7   :  { %v695_v59 = vmax.f32 %v417_v58, 0.0  ;;  %v3343_v60 = vpop.f32.mrb[12].mxu0 }
  0xf8   :  { %v432_v62 = vadd.f32 %v3343_v60, %v4134_v21  ;;  %v426_v63 = vpop.f32.mrb[13].mxu0 }
  0xf9   :  { %v427_v0 = vadd.f32 %v4134_v21, %v426_v63  ;;  %3450 = vmatprep.mubr.msk.f32.mxu1 %vm764_vm1, %v695_v59 }
  0xfa   :  { %3451 = vmatmul.mubr.msk.f32.gmra.mrb[10].mxu1 %vm764_vm1, %v696_v61  ;;  %v698_v3 = vmax.f32 %v432_v62, 0.0 }
  0xfb   :  { %v697_v1 = vmax.f32 %v427_v0, 0.0  ;;  %v3346_v2 = vpop.f32.mrb[14].mxu0 }
  0xfc   :  { %v442_v4 = vadd.f32 %v3346_v2, %v4134_v21  ;;  %v436_v5 = vpop.f32.mrb[15].mxu0 }
  0xfd   :  { %v437_v6 = vadd.f32 %v4134_v21, %v436_v5  ;;  %3453 = vmatprep.mubr.msk.f32.mxu1 %vm764_vm1, %v697_v1 }
  0xfe   :  { %3454 = vmatmul.mubr.msk.f32.gmra.mrb[12].mxu1 %vm764_vm1, %v698_v3  ;;  %v700_v9 = vmax.f32 %v442_v4, 0.0 }
  0xff   :  { %v699_v7 = vmax.f32 %v437_v6, 0.0  ;;  %v3349_v8 = vpop.f32.mrb[16].mxu0 }
 0x100   :  { %v452_v10 = vadd.f32 %v3349_v8, %v4134_v21  ;;  %v446_v11 = vpop.f32.mrb[17].mxu0 }
 0x101   :  { %v447_v12 = vadd.f32 %v4134_v21, %v446_v11  ;;  %3456 = vmatprep.mubr.msk.f32.mxu1 %vm764_vm1, %v699_v7 }
 0x102   :  { %3457 = vmatmul.mubr.msk.f32.gmra.mrb[14].mxu1 %vm764_vm1, %v700_v9  ;;  %v702_v15 = vmax.f32 %v452_v10, 0.0 }
 0x103   :  { %v701_v13 = vmax.f32 %v447_v12, 0.0  ;;  %v3352_v14 = vpop.f32.mrb[18].mxu0 }
 0x104   :  { %v462_v16 = vadd.f32 %v3352_v14, %v4134_v21  ;;  %v456_v17 = vpop.f32.mrb[19].mxu0 }
 0x105   :  { %v457_v18 = vadd.f32 %v4134_v21, %v456_v17  ;;  %3459 = vmatprep.mubr.msk.f32.mxu1 %vm764_vm1, %v701_v13 }
 0x106   :  { %3460 = vmatmul.mubr.msk.f32.gmra.mrb[16].mxu1 %vm764_vm1, %v702_v15  ;;  %v704_v22 = vmax.f32 %v462_v16, 0.0 }
 0x107   :  { %v703_v19 = vmax.f32 %v457_v18, 0.0  ;;  %v3355_v20 = vpop.f32.mrb[20].mxu0 }
 0x108   :  { %v472_v23 = vadd.f32 %v3355_v20, %v4134_v21  ;;  %v466_v24 = vpop.f32.mrb[21].mxu0 }
 0x109   :  { %v467_v25 = vadd.f32 %v4134_v21, %v466_v24  ;;  %3462 = vmatprep.mubr.msk.f32.mxu1 %vm764_vm1, %v703_v19 }
 0x10a   :  { %3463 = vmatmul.mubr.msk.f32.gmra.mrb[18].mxu1 %vm764_vm1, %v704_v22  ;;  %v706_v28 = vmax.f32 %v472_v23, 0.0 }
 0x10b   :  { %v705_v26 = vmax.f32 %v467_v25, 0.0  ;;  %v3358_v27 = vpop.f32.mrb[22].mxu0 }
 0x10c   :  { %v482_v29 = vadd.f32 %v3358_v27, %v4134_v21  ;;  %v476_v30 = vpop.f32.mrb[23].mxu0 }
 0x10d   :  { %v477_v31 = vadd.f32 %v4134_v21, %v476_v30  ;;  %3465 = vmatprep.mubr.msk.f32.mxu1 %vm764_vm1, %v705_v26 }
 0x10e   :  { %3466 = vmatmul.mubr.msk.f32.gmra.mrb[20].mxu1 %vm764_vm1, %v706_v28  ;;  %v708_v34 = vmax.f32 %v482_v29, 0.0 }
 0x10f   :  { %v707_v32 = vmax.f32 %v477_v31, 0.0  ;;  %v3361_v33 = vpop.f32.mrb[24].mxu0 }
 0x110   :  { %v492_v35 = vadd.f32 %v3361_v33, %v4134_v21  ;;  %v486_v36 = vpop.f32.mrb[25].mxu0 }
 0x111   :  { %v487_v37 = vadd.f32 %v4134_v21, %v486_v36  ;;  %3468 = vmatprep.mubr.msk.f32.mxu1 %vm764_vm1, %v707_v32 }
 0x112   :  { %3469 = vmatmul.mubr.msk.f32.gmra.mrb[22].mxu1 %vm764_vm1, %v708_v34  ;;  %v710_v40 = vmax.f32 %v492_v35, 0.0 }
 0x113   :  { %v709_v38 = vmax.f32 %v487_v37, 0.0  ;;  %v3364_v39 = vpop.f32.mrb[26].mxu0 }
 0x114   :  { %v502_v41 = vadd.f32 %v3364_v39, %v4134_v21  ;;  %v496_v42 = vpop.f32.mrb[27].mxu0 }
 0x115   :  { %v497_v43 = vadd.f32 %v4134_v21, %v496_v42  ;;  %3471 = vmatprep.mubr.msk.f32.mxu1 %vm764_vm1, %v709_v38 }
 0x116   :  { %3472 = vmatmul.mubr.msk.f32.gmra.mrb[24].mxu1 %vm764_vm1, %v710_v40  ;;  %v712_v46 = vmax.f32 %v502_v41, 0.0 }
 0x117   :  { %v711_v44 = vmax.f32 %v497_v43, 0.0  ;;  %v3367_v45 = vpop.f32.mrb[28].mxu0 }
 0x118   :  { %v512_v47 = vadd.f32 %v3367_v45, %v4134_v21  ;;  %v506_v48 = vpop.f32.mrb[29].mxu0 }
 0x119   :  { %v507_v49 = vadd.f32 %v4134_v21, %v506_v48  ;;  %3474 = vmatprep.mubr.msk.f32.mxu1 %vm764_vm1, %v711_v44 }
 0x11a   :  { %3475 = vmatmul.mubr.msk.f32.gmra.mrb[26].mxu1 %vm764_vm1, %v712_v46  ;;  %v714_v52 = vmax.f32 %v512_v47, 0.0 }
 0x11b   :  { %v713_v50 = vmax.f32 %v507_v49, 0.0  ;;  %v3370_v51 = vpop.f32.mrb[30].mxu0 }
 0x11c   :  { %v522_v53 = vadd.f32 %v3370_v51, %v4134_v21  ;;  %v516_v54 = vpop.f32.mrb[31].mxu0 }
 0x11d   :  { %v517_v55 = vadd.f32 %v4134_v21, %v516_v54  ;;  %3477 = vmatprep.mubr.msk.f32.mxu1 %vm764_vm1, %v713_v50 }
 0x11e   :  { %3478 = vmatmul.mubr.msk.f32.gmra.mrb[28].mxu1 %vm764_vm1, %v714_v52  ;;  %v716_v58 = vmax.f32 %v522_v53, 0.0 }
 0x11f   :  { %v715_v56 = vmax.f32 %v517_v55, 0.0  ;;  %v3373_v57 = vpop.f32.mrb[32].mxu0 }
 0x120   :  { %v532_v59 = vadd.f32 %v3373_v57, %v4134_v21  ;;  %v526_v60 = vpop.f32.mrb[33].mxu0 }
 0x121   :  { %v527_v61 = vadd.f32 %v4134_v21, %v526_v60  ;;  %3480 = vmatprep.mubr.msk.f32.mxu1 %vm764_vm1, %v715_v56 }
 0x122   :  { %3481 = vmatmul.mubr.msk.f32.gmra.mrb[30].mxu1 %vm764_vm1, %v716_v58  ;;  %v718_v0 = vmax.f32 %v532_v59, 0.0 }
 0x123   :  { %v717_v62 = vmax.f32 %v527_v61, 0.0  ;;  %v3376_v63 = vpop.f32.mrb[34].mxu0 }
 0x124   :  { %v542_v1 = vadd.f32 %v3376_v63, %v4134_v21  ;;  %v536_v2 = vpop.f32.mrb[35].mxu0 }
 0x125   :  { %v537_v3 = vadd.f32 %v4134_v21, %v536_v2  ;;  %3483 = vmatprep.mubr.msk.f32.mxu1 %vm764_vm1, %v717_v62 }
 0x126   :  { %3484 = vmatmul.mubr.msk.f32.gmra.mrb[32].mxu1 %vm764_vm1, %v718_v0  ;;  %v720_v6 = vmax.f32 %v542_v1, 0.0 }
 0x127   :  { %v719_v4 = vmax.f32 %v537_v3, 0.0  ;;  %v3379_v5 = vpop.f32.mrb[36].mxu0 }
 0x128   :  { %v552_v7 = vadd.f32 %v3379_v5, %v4134_v21  ;;  %v546_v8 = vpop.f32.mrb[37].mxu0 }
 0x129   :  { %v547_v9 = vadd.f32 %v4134_v21, %v546_v8  ;;  %3486 = vmatprep.mubr.msk.f32.mxu1 %vm764_vm1, %v719_v4 }
 0x12a   :  { %3487 = vmatmul.mubr.msk.f32.gmra.mrb[34].mxu1 %vm764_vm1, %v720_v6  ;;  %v722_v12 = vmax.f32 %v552_v7, 0.0 }
 0x12b   :  { %v721_v10 = vmax.f32 %v547_v9, 0.0  ;;  %v3382_v11 = vpop.f32.mrb[38].mxu0 }
 0x12c   :  { %v562_v13 = vadd.f32 %v3382_v11, %v4134_v21  ;;  %v556_v14 = vpop.f32.mrb[39].mxu0 }
 0x12d   :  { %v557_v15 = vadd.f32 %v4134_v21, %v556_v14  ;;  %3489 = vmatprep.mubr.msk.f32.mxu1 %vm764_vm1, %v721_v10 }
 0x12e   :  { %3490 = vmatmul.mubr.msk.f32.gmra.mrb[36].mxu1 %vm764_vm1, %v722_v12  ;;  %v724_v18 = vmax.f32 %v562_v13, 0.0 }
 0x12f   :  { %v723_v16 = vmax.f32 %v557_v15, 0.0  ;;  %v3385_v17 = vpop.f32.mrb[40].mxu0 }
 0x130   :  { %v572_v19 = vadd.f32 %v3385_v17, %v4134_v21  ;;  %v566_v20 = vpop.f32.mrb[41].mxu0 }
 0x131   :  { %v567_v22 = vadd.f32 %v4134_v21, %v566_v20  ;;  %3492 = vmatprep.mubr.msk.f32.mxu1 %vm764_vm1, %v723_v16 }
 0x132   :  { %3493 = vmatmul.mubr.msk.f32.gmra.mrb[38].mxu1 %vm764_vm1, %v724_v18  ;;  %v726_v25 = vmax.f32 %v572_v19, 0.0 }
 0x133   :  { %v725_v23 = vmax.f32 %v567_v22, 0.0  ;;  %v3388_v24 = vpop.f32.mrb[42].mxu0 }
 0x134   :  { %v582_v26 = vadd.f32 %v3388_v24, %v4134_v21  ;;  %v576_v27 = vpop.f32.mrb[43].mxu0 }
 0x135   :  { %v577_v28 = vadd.f32 %v4134_v21, %v576_v27  ;;  %3495 = vmatprep.mubr.msk.f32.mxu1 %vm764_vm1, %v725_v23 }
 0x136   :  { %3496 = vmatmul.mubr.msk.f32.gmra.mrb[40].mxu1 %vm764_vm1, %v726_v25  ;;  %v728_v31 = vmax.f32 %v582_v26, 0.0 }
 0x137   :  { %v727_v29 = vmax.f32 %v577_v28, 0.0  ;;  %v3391_v30 = vpop.f32.mrb[44].mxu0  ;;  %v2058_v28 = vld [vmem:[%s4878_s7] sm:$0xff] }
 0x138   :  { %v592_v32 = vadd.f32 %v3391_v30, %v4134_v21  ;;  %v586_v33 = vpop.f32.mrb[45].mxu0 }
 0x139   :  { %v587_v34 = vadd.f32 %v4134_v21, %v586_v33  ;;  %3498 = vmatprep.mubr.msk.f32.mxu1 %vm764_vm1, %v727_v29  ;;  %v2059_v29 = vld [vmem:[%s4878_s7 + $0x8] sm:$0xff] }
 0x13a   :  { %3499 = vmatmul.mubr.msk.f32.gmra.mrb[42].mxu1 %vm764_vm1, %v728_v31  ;;  %v730_v37 = vmax.f32 %v592_v32, 0.0  ;;  %v3771_v30 = vpack.c.bf16 %v2059_v29, %v2058_v28 }
 0x13b   :  { %v729_v35 = vmax.f32 %v587_v34, 0.0  ;;  %v3394_v36 = vpop.f32.mrb[46].mxu0 }
 0x13c   :  { %v602_v38 = vadd.f32 %v3394_v36, %v4134_v21  ;;  %v596_v39 = vpop.f32.mrb[47].mxu0  ;;  %3779 = vmatprep.subr.bf16.mxu1 %v3771_v30  ;;  %3772 = vmatprep.subr.bf16.mxu0 %v3771_v30  ;;  %v2061_v36 = vld [vmem:[%s4878_s7 + $0x18] sm:$0xff] }
 0x13d   :  { %v597_v40 = vadd.f32 %v4134_v21, %v596_v39  ;;  %3501 = vmatprep.mubr.msk.f32.mxu1 %vm764_vm1, %v729_v35  ;;  %3781 = vmatpush3.bf16.msra.mxu1 %v3771_v30  ;;  %v2060_v35 = vld [vmem:[%s4878_s7 + $0x10] sm:$0xff] }
 0x13e   :  { %3502 = vmatmul.mubr.msk.f32.gmra.mrb[44].mxu1 %vm764_vm1, %v730_v37  ;;  %v732_v43 = vmax.f32 %v602_v38, 0.0  ;;  %v3775_v39 = vpack.c.bf16 %v2061_v36, %v2060_v35 }
 0x13f   :  { %v731_v41 = vmax.f32 %v597_v40, 0.0  ;;  %v3397_v42 = vpop.f32.mrb[48].mxu0 }
 0x140   :  { %v612_v44 = vadd.f32 %v3397_v42, %v4134_v21  ;;  %v606_v45 = vpop.f32.mrb[49].mxu0  ;;  %3780 = vmatprep.subr.bf16.mxu1 %v3775_v39 }
 0x141   :  { %v607_v46 = vadd.f32 %v4134_v21, %v606_v45  ;;  %3504 = vmatprep.mubr.msk.f32.mxu1 %vm764_vm1, %v731_v41  ;;  %3782 = vmatpush3.bf16.msra.mxu1 %v3775_v39 }
 0x142   :  { %3505 = vmatmul.mubr.msk.f32.gmra.mrb[46].mxu1 %vm764_vm1, %v732_v43  ;;  %v734_v49 = vmax.f32 %v612_v44, 0.0 }
 0x143   :  { %v733_v47 = vmax.f32 %v607_v46, 0.0  ;;  %v3400_v48 = vpop.f32.mrb[50].mxu0 }
 0x144   :  { %v622_v50 = vadd.f32 %v3400_v48, %v4134_v21  ;;  %v616_v51 = vpop.f32.mrb[51].mxu0 }
 0x145   :  { %v617_v52 = vadd.f32 %v4134_v21, %v616_v51  ;;  %3507 = vmatprep.mubr.msk.f32.mxu1 %vm764_vm1, %v733_v47 }
 0x146   :  { %3508 = vmatmul.mubr.msk.f32.gmra.mrb[48].mxu1 %vm764_vm1, %v734_v49  ;;  %v736_v55 = vmax.f32 %v622_v50, 0.0 }
 0x147   :  { %v735_v53 = vmax.f32 %v617_v52, 0.0  ;;  %v3403_v54 = vpop.f32.mrb[52].mxu0 }
 0x148   :  { %v632_v56 = vadd.f32 %v3403_v54, %v4134_v21  ;;  %v626_v57 = vpop.f32.mrb[53].mxu0 }
 0x149   :  { %v627_v58 = vadd.f32 %v4134_v21, %v626_v57  ;;  %3510 = vmatprep.mubr.msk.f32.mxu1 %vm764_vm1, %v735_v53 }
 0x14a   :  { %3511 = vmatmul.mubr.msk.f32.gmra.mrb[50].mxu1 %vm764_vm1, %v736_v55  ;;  %v738_v61 = vmax.f32 %v632_v56, 0.0 }
 0x14b   :  { %v737_v59 = vmax.f32 %v627_v58, 0.0  ;;  %v3406_v60 = vpop.f32.mrb[54].mxu0 }
 0x14c   :  { %v642_v62 = vadd.f32 %v3406_v60, %v4134_v21  ;;  %v636_v63 = vpop.f32.mrb[55].mxu0 }
 0x14d   :  { %v637_v0 = vadd.f32 %v4134_v21, %v636_v63  ;;  %3513 = vmatprep.mubr.msk.f32.mxu1 %vm764_vm1, %v737_v59 }
 0x14e   :  { %3514 = vmatmul.mubr.msk.f32.gmra.mrb[52].mxu1 %vm764_vm1, %v738_v61  ;;  %v740_v3 = vmax.f32 %v642_v62, 0.0 }
 0x14f   :  { %v739_v1 = vmax.f32 %v637_v0, 0.0  ;;  %v3409_v2 = vpop.f32.mrb[56].mxu0 }
 0x150   :  { %v652_v4 = vadd.f32 %v3409_v2, %v4134_v21  ;;  %v646_v5 = vpop.f32.mrb[57].mxu0 }
 0x151   :  { %v647_v6 = vadd.f32 %v4134_v21, %v646_v5  ;;  %3516 = vmatprep.mubr.msk.f32.mxu1 %vm764_vm1, %v739_v1 }
 0x152   :  { %3517 = vmatmul.mubr.msk.f32.gmra.mrb[54].mxu1 %vm764_vm1, %v740_v3  ;;  %v742_v9 = vmax.f32 %v652_v4, 0.0 }
 0x153   :  { %v741_v7 = vmax.f32 %v647_v6, 0.0  ;;  %v3412_v8 = vpop.f32.mrb[58].mxu0 }
 0x154   :  { %v662_v10 = vadd.f32 %v3412_v8, %v4134_v21  ;;  %v656_v11 = vpop.f32.mrb[59].mxu0 }
 0x155   :  { %v657_v12 = vadd.f32 %v4134_v21, %v656_v11  ;;  %3519 = vmatprep.mubr.msk.f32.mxu1 %vm764_vm1, %v741_v7 }
 0x156   :  { %3520 = vmatmul.mubr.msk.f32.gmra.mrb[56].mxu1 %vm764_vm1, %v742_v9  ;;  %v744_v15 = vmax.f32 %v662_v10, 0.0 }
 0x157   :  { %v743_v13 = vmax.f32 %v657_v12, 0.0  ;;  %v3415_v14 = vpop.f32.mrb[60].mxu0 }
 0x158   :  { %v672_v16 = vadd.f32 %v3415_v14, %v4134_v21  ;;  %v666_v17 = vpop.f32.mrb[61].mxu0 }
 0x159   :  { %v667_v18 = vadd.f32 %v4134_v21, %v666_v17  ;;  %3522 = vmatprep.mubr.msk.f32.mxu1 %vm764_vm1, %v743_v13 }
 0x15a   :  { %3523 = vmatmul.mubr.msk.f32.gmra.mrb[58].mxu1 %vm764_vm1, %v744_v15  ;;  %v746_v22 = vmax.f32 %v672_v16, 0.0 }
 0x15b   :  { %v745_v19 = vmax.f32 %v667_v18, 0.0  ;;  %v3418_v20 = vpop.f32.mrb[62].mxu0 }
 0x15c   :  { %v682_v23 = vadd.f32 %v3418_v20, %v4134_v21  ;;  %v676_v24 = vpop.f32.mrb[63].mxu0 }
 0x15d   :  { %v677_v25 = vadd.f32 %v4134_v21, %v676_v24  ;;  %3525 = vmatprep.mubr.msk.f32.mxu1 %vm764_vm1, %v745_v19  ;;  %v4279_v21 = vld [vmem:[%s4879_s4] ss:$0 sm:$0xff] }
 0x15e   :  { %3526 = vmatmul.mubr.msk.f32.gmra.mrb[60].mxu1 %vm764_vm1, %v746_v22  ;;  %v748_v27 = vmax.f32 %v682_v23, 0.0 }
 0x15f   :  { %v747_v26 = vmax.f32 %v677_v25, 0.0 }
 0x161   :  { %3528 = vmatprep.mubr.msk.f32.mxu1 %vm764_vm1, %v747_v26 }
 0x162   :  { %3529 = vmatmul.mubr.msk.f32.gmra.mrb[62].mxu1 %vm764_vm1, %v748_v27 }
 0x1b9   :  { %v3437_v31 = vpop.f32.mrb[0].mxu1 }
 0x1ba   :  { %v1029_v32 = vadd.f32 %v3437_v31, %v4279_v21  ;;  %v1023_v33 = vpop.f32.mrb[1].mxu1 }
 0x1bb   :  { %v1024_v34 = vadd.f32 %v4279_v21, %v1023_v33 }
 0x1bc   :  { %v1343_v40 = vmax.f32 %v1029_v32, 0.0 }
 0x1bd   :  { %v1342_v37 = vmax.f32 %v1024_v34, 0.0  ;;  %v3440_v38 = vpop.f32.mrb[2].mxu1 }
 0x1be   :  { %v1039_v41 = vadd.f32 %v3440_v38, %v4279_v21  ;;  %v1033_v42 = vpop.f32.mrb[3].mxu1 }
 0x1bf   :  { %v1034_v43 = vadd.f32 %v4279_v21, %v1033_v42  ;;  %3539 = vmatprep.mubr.msk.f32.mxu0 %vm107_vm0, %v1342_v37 }
 0x1c0   :  { %3540 = vmatmul.mubr.msk.f32.vlgmr.msra.gmra.mrb[64].mxu0 %vm107_vm0, %v1343_v40  ;;  %v1345_v46 = vmax.f32 %v1039_v41, 0.0 }
 0x1c1   :  { %v1344_v44 = vmax.f32 %v1034_v43, 0.0  ;;  %v3443_v45 = vpop.f32.mrb[4].mxu1  ;;  %3774 = vmatpush3.bf16.msra.mxu0 %v3771_v30 }
 0x1c2   :  { %v1049_v47 = vadd.f32 %v3443_v45, %v4279_v21  ;;  %v1043_v48 = vpop.f32.mrb[5].mxu1  ;;  %3776 = vmatprep.subr.bf16.mxu0 %v3775_v39 }
 0x1c3   :  { %v1044_v49 = vadd.f32 %v4279_v21, %v1043_v48  ;;  %3542 = vmatprep.mubr.msk.f32.mxu0 %vm107_vm0, %v1344_v44 }
 0x1c4   :  { %3543 = vmatmul.mubr.msk.f32.gmra.mrb[66].mxu0 %vm107_vm0, %v1345_v46  ;;  %v1347_v52 = vmax.f32 %v1049_v47, 0.0 }
 0x1c5   :  { %v1346_v50 = vmax.f32 %v1044_v49, 0.0  ;;  %v3446_v51 = vpop.f32.mrb[6].mxu1  ;;  %3778 = vmatpush3.bf16.msra.mxu0 %v3775_v39 }
 0x1c6   :  { %v1059_v53 = vadd.f32 %v3446_v51, %v4279_v21  ;;  %v1053_v54 = vpop.f32.mrb[7].mxu1 }
 0x1c7   :  { %v1054_v55 = vadd.f32 %v4279_v21, %v1053_v54  ;;  %3545 = vmatprep.mubr.msk.f32.mxu0 %vm107_vm0, %v1346_v50 }
 0x1c8   :  { %3546 = vmatmul.mubr.msk.f32.gmra.mrb[68].mxu0 %vm107_vm0, %v1347_v52  ;;  %v1349_v58 = vmax.f32 %v1059_v53, 0.0 }
 0x1c9   :  { %v1348_v56 = vmax.f32 %v1054_v55, 0.0  ;;  %v3449_v57 = vpop.f32.mrb[8].mxu1 }
 0x1ca   :  { %v1069_v59 = vadd.f32 %v3449_v57, %v4279_v21  ;;  %v1063_v60 = vpop.f32.mrb[9].mxu1 }
 0x1cb   :  { %v1064_v61 = vadd.f32 %v4279_v21, %v1063_v60  ;;  %3548 = vmatprep.mubr.msk.f32.mxu0 %vm107_vm0, %v1348_v56 }
 0x1cc   :  { %3549 = vmatmul.mubr.msk.f32.gmra.mrb[70].mxu0 %vm107_vm0, %v1349_v58  ;;  %v1351_v0 = vmax.f32 %v1069_v59, 0.0 }
 0x1cd   :  { %v1350_v62 = vmax.f32 %v1064_v61, 0.0  ;;  %v3452_v63 = vpop.f32.mrb[10].mxu1 }
 0x1ce   :  { %v1079_v1 = vadd.f32 %v3452_v63, %v4279_v21  ;;  %v1073_v2 = vpop.f32.mrb[11].mxu1 }
 0x1cf   :  { %v1074_v3 = vadd.f32 %v4279_v21, %v1073_v2  ;;  %3551 = vmatprep.mubr.msk.f32.mxu0 %vm107_vm0, %v1350_v62 }
 0x1d0   :  { %3552 = vmatmul.mubr.msk.f32.gmra.mrb[72].mxu0 %vm107_vm0, %v1351_v0  ;;  %v1353_v6 = vmax.f32 %v1079_v1, 0.0 }
 0x1d1   :  { %v1352_v4 = vmax.f32 %v1074_v3, 0.0  ;;  %v3455_v5 = vpop.f32.mrb[12].mxu1 }
 0x1d2   :  { %v1089_v7 = vadd.f32 %v3455_v5, %v4279_v21  ;;  %v1083_v8 = vpop.f32.mrb[13].mxu1 }
 0x1d3   :  { %v1084_v9 = vadd.f32 %v4279_v21, %v1083_v8  ;;  %3554 = vmatprep.mubr.msk.f32.mxu0 %vm107_vm0, %v1352_v4 }
 0x1d4   :  { %3555 = vmatmul.mubr.msk.f32.gmra.mrb[74].mxu0 %vm107_vm0, %v1353_v6  ;;  %v1355_v12 = vmax.f32 %v1089_v7, 0.0 }
 0x1d5   :  { %v1354_v10 = vmax.f32 %v1084_v9, 0.0  ;;  %v3458_v11 = vpop.f32.mrb[14].mxu1 }
 0x1d6   :  { %v1099_v13 = vadd.f32 %v3458_v11, %v4279_v21  ;;  %v1093_v14 = vpop.f32.mrb[15].mxu1 }
 0x1d7   :  { %v1094_v15 = vadd.f32 %v4279_v21, %v1093_v14  ;;  %3557 = vmatprep.mubr.msk.f32.mxu0 %vm107_vm0, %v1354_v10 }
 0x1d8   :  { %3558 = vmatmul.mubr.msk.f32.gmra.mrb[76].mxu0 %vm107_vm0, %v1355_v12  ;;  %v1357_v18 = vmax.f32 %v1099_v13, 0.0 }
 0x1d9   :  { %v1356_v16 = vmax.f32 %v1094_v15, 0.0  ;;  %v3461_v17 = vpop.f32.mrb[16].mxu1 }
 0x1da   :  { %v1109_v19 = vadd.f32 %v3461_v17, %v4279_v21  ;;  %v1103_v20 = vpop.f32.mrb[17].mxu1 }
 0x1db   :  { %v1104_v22 = vadd.f32 %v4279_v21, %v1103_v20  ;;  %3560 = vmatprep.mubr.msk.f32.mxu0 %vm107_vm0, %v1356_v16 }
 0x1dc   :  { %3561 = vmatmul.mubr.msk.f32.gmra.mrb[78].mxu0 %vm107_vm0, %v1357_v18  ;;  %v1359_v25 = vmax.f32 %v1109_v19, 0.0 }
 0x1dd   :  { %v1358_v23 = vmax.f32 %v1104_v22, 0.0  ;;  %v3464_v24 = vpop.f32.mrb[18].mxu1 }
 0x1de   :  { %v1119_v26 = vadd.f32 %v3464_v24, %v4279_v21  ;;  %v1113_v27 = vpop.f32.mrb[19].mxu1 }
 0x1df   :  { %v1114_v28 = vadd.f32 %v4279_v21, %v1113_v27  ;;  %3563 = vmatprep.mubr.msk.f32.mxu0 %vm107_vm0, %v1358_v23 }
 0x1e0   :  { %3564 = vmatmul.mubr.msk.f32.gmra.mrb[80].mxu0 %vm107_vm0, %v1359_v25  ;;  %v1361_v31 = vmax.f32 %v1119_v26, 0.0 }
 0x1e1   :  { %v1360_v29 = vmax.f32 %v1114_v28, 0.0  ;;  %v3467_v30 = vpop.f32.mrb[20].mxu1 }
 0x1e2   :  { %v1129_v32 = vadd.f32 %v3467_v30, %v4279_v21  ;;  %v1123_v33 = vpop.f32.mrb[21].mxu1 }
 0x1e3   :  { %v1124_v34 = vadd.f32 %v4279_v21, %v1123_v33  ;;  %3566 = vmatprep.mubr.msk.f32.mxu0 %vm107_vm0, %v1360_v29 }
 0x1e4   :  { %3567 = vmatmul.mubr.msk.f32.gmra.mrb[82].mxu0 %vm107_vm0, %v1361_v31  ;;  %v1363_v37 = vmax.f32 %v1129_v32, 0.0 }
 0x1e5   :  { %v1362_v35 = vmax.f32 %v1124_v34, 0.0  ;;  %v3470_v36 = vpop.f32.mrb[22].mxu1 }
 0x1e6   :  { %v1139_v38 = vadd.f32 %v3470_v36, %v4279_v21  ;;  %v1133_v39 = vpop.f32.mrb[23].mxu1 }
 0x1e7   :  { %v1134_v40 = vadd.f32 %v4279_v21, %v1133_v39  ;;  %3569 = vmatprep.mubr.msk.f32.mxu0 %vm107_vm0, %v1362_v35 }
 0x1e8   :  { %3570 = vmatmul.mubr.msk.f32.gmra.mrb[84].mxu0 %vm107_vm0, %v1363_v37  ;;  %v1365_v43 = vmax.f32 %v1139_v38, 0.0 }
 0x1e9   :  { %v1364_v41 = vmax.f32 %v1134_v40, 0.0  ;;  %v3473_v42 = vpop.f32.mrb[24].mxu1 }
 0x1ea   :  { %v1149_v44 = vadd.f32 %v3473_v42, %v4279_v21  ;;  %v1143_v45 = vpop.f32.mrb[25].mxu1 }
 0x1eb   :  { %v1144_v46 = vadd.f32 %v4279_v21, %v1143_v45  ;;  %3572 = vmatprep.mubr.msk.f32.mxu0 %vm107_vm0, %v1364_v41 }
 0x1ec   :  { %3573 = vmatmul.mubr.msk.f32.gmra.mrb[86].mxu0 %vm107_vm0, %v1365_v43  ;;  %v1367_v49 = vmax.f32 %v1149_v44, 0.0 }
 0x1ed   :  { %v1366_v47 = vmax.f32 %v1144_v46, 0.0  ;;  %v3476_v48 = vpop.f32.mrb[26].mxu1 }
 0x1ee   :  { %v1159_v50 = vadd.f32 %v3476_v48, %v4279_v21  ;;  %v1153_v51 = vpop.f32.mrb[27].mxu1 }
 0x1ef   :  { %v1154_v52 = vadd.f32 %v4279_v21, %v1153_v51  ;;  %3575 = vmatprep.mubr.msk.f32.mxu0 %vm107_vm0, %v1366_v47 }
 0x1f0   :  { %3576 = vmatmul.mubr.msk.f32.gmra.mrb[88].mxu0 %vm107_vm0, %v1367_v49  ;;  %v1369_v55 = vmax.f32 %v1159_v50, 0.0 }
 0x1f1   :  { %v1368_v53 = vmax.f32 %v1154_v52, 0.0  ;;  %v3479_v54 = vpop.f32.mrb[28].mxu1 }
 0x1f2   :  { %v1169_v56 = vadd.f32 %v3479_v54, %v4279_v21  ;;  %v1163_v57 = vpop.f32.mrb[29].mxu1 }
 0x1f3   :  { %v1164_v58 = vadd.f32 %v4279_v21, %v1163_v57  ;;  %3578 = vmatprep.mubr.msk.f32.mxu0 %vm107_vm0, %v1368_v53 }
 0x1f4   :  { %3579 = vmatmul.mubr.msk.f32.gmra.mrb[90].mxu0 %vm107_vm0, %v1369_v55  ;;  %v1371_v61 = vmax.f32 %v1169_v56, 0.0 }
 0x1f5   :  { %v1370_v59 = vmax.f32 %v1164_v58, 0.0  ;;  %v3482_v60 = vpop.f32.mrb[30].mxu1 }
 0x1f6   :  { %v1179_v62 = vadd.f32 %v3482_v60, %v4279_v21  ;;  %v1173_v63 = vpop.f32.mrb[31].mxu1 }
 0x1f7   :  { %v1174_v0 = vadd.f32 %v4279_v21, %v1173_v63  ;;  %3581 = vmatprep.mubr.msk.f32.mxu0 %vm107_vm0, %v1370_v59 }
 0x1f8   :  { %3582 = vmatmul.mubr.msk.f32.gmra.mrb[92].mxu0 %vm107_vm0, %v1371_v61  ;;  %v1373_v3 = vmax.f32 %v1179_v62, 0.0 }
 0x1f9   :  { %v1372_v1 = vmax.f32 %v1174_v0, 0.0  ;;  %v3485_v2 = vpop.f32.mrb[32].mxu1 }
 0x1fa   :  { %v1189_v4 = vadd.f32 %v3485_v2, %v4279_v21  ;;  %v1183_v5 = vpop.f32.mrb[33].mxu1 }
 0x1fb   :  { %v1184_v6 = vadd.f32 %v4279_v21, %v1183_v5  ;;  %3584 = vmatprep.mubr.msk.f32.mxu0 %vm107_vm0, %v1372_v1 }
 0x1fc   :  { %3585 = vmatmul.mubr.msk.f32.gmra.mrb[94].mxu0 %vm107_vm0, %v1373_v3  ;;  %v1375_v9 = vmax.f32 %v1189_v4, 0.0 }
 0x1fd   :  { %v1374_v7 = vmax.f32 %v1184_v6, 0.0  ;;  %v3488_v8 = vpop.f32.mrb[34].mxu1 }
 0x1fe   :  { %v1199_v10 = vadd.f32 %v3488_v8, %v4279_v21  ;;  %v1193_v11 = vpop.f32.mrb[35].mxu1 }
 0x1ff   :  { %v1194_v12 = vadd.f32 %v4279_v21, %v1193_v11  ;;  %3587 = vmatprep.mubr.msk.f32.mxu0 %vm107_vm0, %v1374_v7 }
 0x200   :  { %3588 = vmatmul.mubr.msk.f32.gmra.mrb[96].mxu0 %vm107_vm0, %v1375_v9  ;;  %v1377_v15 = vmax.f32 %v1199_v10, 0.0 }
 0x201   :  { %v1376_v13 = vmax.f32 %v1194_v12, 0.0  ;;  %v3491_v14 = vpop.f32.mrb[36].mxu1 }
 0x202   :  { %v1209_v16 = vadd.f32 %v3491_v14, %v4279_v21  ;;  %v1203_v17 = vpop.f32.mrb[37].mxu1 }
 0x203   :  { %v1204_v18 = vadd.f32 %v4279_v21, %v1203_v17  ;;  %3590 = vmatprep.mubr.msk.f32.mxu0 %vm107_vm0, %v1376_v13 }
 0x204   :  { %3591 = vmatmul.mubr.msk.f32.gmra.mrb[98].mxu0 %vm107_vm0, %v1377_v15  ;;  %v1379_v22 = vmax.f32 %v1209_v16, 0.0 }
 0x205   :  { %v1378_v19 = vmax.f32 %v1204_v18, 0.0  ;;  %v3494_v20 = vpop.f32.mrb[38].mxu1 }
 0x206   :  { %v1219_v23 = vadd.f32 %v3494_v20, %v4279_v21  ;;  %v1213_v24 = vpop.f32.mrb[39].mxu1 }
 0x207   :  { %v1214_v25 = vadd.f32 %v4279_v21, %v1213_v24  ;;  %3593 = vmatprep.mubr.msk.f32.mxu0 %vm107_vm0, %v1378_v19 }
 0x208   :  { %3594 = vmatmul.mubr.msk.f32.gmra.mrb[100].mxu0 %vm107_vm0, %v1379_v22  ;;  %v1381_v28 = vmax.f32 %v1219_v23, 0.0 }
 0x209   :  { %v1380_v26 = vmax.f32 %v1214_v25, 0.0  ;;  %v3497_v27 = vpop.f32.mrb[40].mxu1 }
 0x20a   :  { %v1229_v29 = vadd.f32 %v3497_v27, %v4279_v21  ;;  %v1223_v30 = vpop.f32.mrb[41].mxu1 }
 0x20b   :  { %v1224_v31 = vadd.f32 %v4279_v21, %v1223_v30  ;;  %3596 = vmatprep.mubr.msk.f32.mxu0 %vm107_vm0, %v1380_v26 }
 0x20c   :  { %3597 = vmatmul.mubr.msk.f32.gmra.mrb[102].mxu0 %vm107_vm0, %v1381_v28  ;;  %v1383_v34 = vmax.f32 %v1229_v29, 0.0 }
 0x20d   :  { %v1382_v32 = vmax.f32 %v1224_v31, 0.0  ;;  %v3500_v33 = vpop.f32.mrb[42].mxu1 }
 0x20e   :  { %v1239_v35 = vadd.f32 %v3500_v33, %v4279_v21  ;;  %v1233_v36 = vpop.f32.mrb[43].mxu1 }
 0x20f   :  { %v1234_v37 = vadd.f32 %v4279_v21, %v1233_v36  ;;  %3599 = vmatprep.mubr.msk.f32.mxu0 %vm107_vm0, %v1382_v32 }
 0x210   :  { %3600 = vmatmul.mubr.msk.f32.gmra.mrb[104].mxu0 %vm107_vm0, %v1383_v34  ;;  %v1385_v40 = vmax.f32 %v1239_v35, 0.0 }
 0x211   :  { %v1384_v38 = vmax.f32 %v1234_v37, 0.0  ;;  %v3503_v39 = vpop.f32.mrb[44].mxu1  ;;  %v4418_v37 = vld [vmem:[%s4880_s6] ss:$0 sm:$0xff] }
 0x212   :  { %v1249_v41 = vadd.f32 %v3503_v39, %v4279_v21  ;;  %v1243_v42 = vpop.f32.mrb[45].mxu1 }
 0x213   :  { %v1244_v43 = vadd.f32 %v4279_v21, %v1243_v42  ;;  %3602 = vmatprep.mubr.msk.f32.mxu0 %vm107_vm0, %v1384_v38 }
 0x214   :  { %3603 = vmatmul.mubr.msk.f32.gmra.mrb[106].mxu0 %vm107_vm0, %v1385_v40  ;;  %v1387_v46 = vmax.f32 %v1249_v41, 0.0 }
 0x215   :  { %v1386_v44 = vmax.f32 %v1244_v43, 0.0  ;;  %v3506_v45 = vpop.f32.mrb[46].mxu1 }
 0x216   :  { %v1259_v47 = vadd.f32 %v3506_v45, %v4279_v21  ;;  %v1253_v48 = vpop.f32.mrb[47].mxu1 }
 0x217   :  { %v1254_v49 = vadd.f32 %v4279_v21, %v1253_v48  ;;  %3605 = vmatprep.mubr.msk.f32.mxu0 %vm107_vm0, %v1386_v44 }
 0x218   :  { %3606 = vmatmul.mubr.msk.f32.gmra.mrb[108].mxu0 %vm107_vm0, %v1387_v46  ;;  %v1389_v52 = vmax.f32 %v1259_v47, 0.0 }
 0x219   :  { %v1388_v50 = vmax.f32 %v1254_v49, 0.0  ;;  %v3509_v51 = vpop.f32.mrb[48].mxu1 }
 0x21a   :  { %v1269_v53 = vadd.f32 %v3509_v51, %v4279_v21  ;;  %v1263_v54 = vpop.f32.mrb[49].mxu1 }
 0x21b   :  { %v1264_v55 = vadd.f32 %v4279_v21, %v1263_v54  ;;  %3608 = vmatprep.mubr.msk.f32.mxu0 %vm107_vm0, %v1388_v50 }
 0x21c   :  { %3609 = vmatmul.mubr.msk.f32.gmra.mrb[110].mxu0 %vm107_vm0, %v1389_v52  ;;  %v1391_v58 = vmax.f32 %v1269_v53, 0.0 }
 0x21d   :  { %v1390_v56 = vmax.f32 %v1264_v55, 0.0  ;;  %v3512_v57 = vpop.f32.mrb[50].mxu1 }
 0x21e   :  { %v1279_v59 = vadd.f32 %v3512_v57, %v4279_v21  ;;  %v1273_v60 = vpop.f32.mrb[51].mxu1 }
 0x21f   :  { %v1274_v61 = vadd.f32 %v4279_v21, %v1273_v60  ;;  %3611 = vmatprep.mubr.msk.f32.mxu0 %vm107_vm0, %v1390_v56 }
 0x220   :  { %3612 = vmatmul.mubr.msk.f32.gmra.mrb[112].mxu0 %vm107_vm0, %v1391_v58  ;;  %v1393_v0 = vmax.f32 %v1279_v59, 0.0 }
 0x221   :  { %v1392_v62 = vmax.f32 %v1274_v61, 0.0  ;;  %v3515_v63 = vpop.f32.mrb[52].mxu1 }
 0x222   :  { %v1289_v1 = vadd.f32 %v3515_v63, %v4279_v21  ;;  %v1283_v2 = vpop.f32.mrb[53].mxu1 }
 0x223   :  { %v1284_v3 = vadd.f32 %v4279_v21, %v1283_v2  ;;  %3614 = vmatprep.mubr.msk.f32.mxu0 %vm107_vm0, %v1392_v62 }
 0x224   :  { %3615 = vmatmul.mubr.msk.f32.gmra.mrb[114].mxu0 %vm107_vm0, %v1393_v0  ;;  %v1395_v6 = vmax.f32 %v1289_v1, 0.0 }
 0x225   :  { %v1394_v4 = vmax.f32 %v1284_v3, 0.0  ;;  %v3518_v5 = vpop.f32.mrb[54].mxu1 }
 0x226   :  { %v1299_v7 = vadd.f32 %v3518_v5, %v4279_v21  ;;  %v1293_v8 = vpop.f32.mrb[55].mxu1 }
 0x227   :  { %v1294_v9 = vadd.f32 %v4279_v21, %v1293_v8  ;;  %3617 = vmatprep.mubr.msk.f32.mxu0 %vm107_vm0, %v1394_v4 }
 0x228   :  { %3618 = vmatmul.mubr.msk.f32.gmra.mrb[116].mxu0 %vm107_vm0, %v1395_v6  ;;  %v1397_v12 = vmax.f32 %v1299_v7, 0.0 }
 0x229   :  { %v1396_v10 = vmax.f32 %v1294_v9, 0.0  ;;  %v3521_v11 = vpop.f32.mrb[56].mxu1 }
 0x22a   :  { %v1309_v13 = vadd.f32 %v3521_v11, %v4279_v21  ;;  %v1303_v14 = vpop.f32.mrb[57].mxu1 }
 0x22b   :  { %v1304_v15 = vadd.f32 %v4279_v21, %v1303_v14  ;;  %3620 = vmatprep.mubr.msk.f32.mxu0 %vm107_vm0, %v1396_v10 }
 0x22c   :  { %3621 = vmatmul.mubr.msk.f32.gmra.mrb[118].mxu0 %vm107_vm0, %v1397_v12  ;;  %v1399_v18 = vmax.f32 %v1309_v13, 0.0 }
 0x22d   :  { %v1398_v16 = vmax.f32 %v1304_v15, 0.0  ;;  %v3524_v17 = vpop.f32.mrb[58].mxu1 }
 0x22e   :  { %v1319_v19 = vadd.f32 %v3524_v17, %v4279_v21  ;;  %v1313_v20 = vpop.f32.mrb[59].mxu1 }
 0x22f   :  { %v1314_v22 = vadd.f32 %v4279_v21, %v1313_v20  ;;  %3623 = vmatprep.mubr.msk.f32.mxu0 %vm107_vm0, %v1398_v16 }
 0x230   :  { %3624 = vmatmul.mubr.msk.f32.gmra.mrb[120].mxu0 %vm107_vm0, %v1399_v18  ;;  %v1401_v25 = vmax.f32 %v1319_v19, 0.0 }
 0x231   :  { %v1400_v23 = vmax.f32 %v1314_v22, 0.0  ;;  %v3527_v24 = vpop.f32.mrb[60].mxu1 }
 0x232   :  { %v1329_v26 = vadd.f32 %v3527_v24, %v4279_v21  ;;  %v1323_v27 = vpop.f32.mrb[61].mxu1 }
 0x233   :  { %v1324_v28 = vadd.f32 %v4279_v21, %v1323_v27  ;;  %3626 = vmatprep.mubr.msk.f32.mxu0 %vm107_vm0, %v1400_v23 }
 0x234   :  { %3627 = vmatmul.mubr.msk.f32.gmra.mrb[122].mxu0 %vm107_vm0, %v1401_v25  ;;  %v1403_v31 = vmax.f32 %v1329_v26, 0.0 }
 0x235   :  { %v1402_v29 = vmax.f32 %v1324_v28, 0.0  ;;  %v3530_v30 = vpop.f32.mrb[62].mxu1 }
 0x236   :  { %v1339_v32 = vadd.f32 %v3530_v30, %v4279_v21  ;;  %v1333_v33 = vpop.f32.mrb[63].mxu1 }
 0x237   :  { %v1334_v34 = vadd.f32 %v4279_v21, %v1333_v33  ;;  %3629 = vmatprep.mubr.msk.f32.mxu0 %vm107_vm0, %v1402_v29 }
 0x238   :  { %3630 = vmatmul.mubr.msk.f32.gmra.mrb[124].mxu0 %vm107_vm0, %v1403_v31  ;;  %v1405_v36 = vmax.f32 %v1339_v32, 0.0 }
 0x239   :  { %v1404_v35 = vmax.f32 %v1334_v34, 0.0 }
 0x23b   :  { %3632 = vmatprep.mubr.msk.f32.mxu0 %vm107_vm0, %v1404_v35 }
 0x23c   :  { %3633 = vmatmul.mubr.msk.f32.gmra.mrb[126].mxu0 %vm107_vm0, %v1405_v36 }
 0x293   :  { %v3541_v38 = vpop.f32.mrb[64].mxu0 }
 0x294   :  { %v1681_v39 = vadd.f32 %v3541_v38, %v4418_v37  ;;  %v1675_v40 = vpop.f32.mrb[65].mxu0 }
 0x295   :  { %v1676_v21 = vadd.f32 %v4418_v37, %v1675_v40 }
 0x296   :  { %v1995_v43 = vmax.f32 %v1681_v39, 0.0 }
 0x297   :  { %v1994_v41 = vmax.f32 %v1676_v21, 0.0  ;;  %v3544_v42 = vpop.f32.mrb[66].mxu0 }
 0x298   :  { %v1691_v44 = vadd.f32 %v3544_v42, %v4418_v37  ;;  %v1685_v45 = vpop.f32.mrb[67].mxu0 }
 0x299   :  { %v1686_v46 = vadd.f32 %v4418_v37, %v1685_v45  ;;  %3643 = vmatprep.mubr.msk.f32.mxu0 %vm107_vm0, %v1994_v41 }
 0x29a   :  { %3644 = vmatmul.mubr.msk.f32.vlgmr.msra.gmra.mrb[128].mxu0 %vm107_vm0, %v1995_v43  ;;  %v1997_v49 = vmax.f32 %v1691_v44, 0.0 }
 0x29b   :  { %v1996_v47 = vmax.f32 %v1686_v46, 0.0  ;;  %v3547_v48 = vpop.f32.mrb[68].mxu0 }
 0x29c   :  { %v1701_v50 = vadd.f32 %v3547_v48, %v4418_v37  ;;  %v1695_v51 = vpop.f32.mrb[69].mxu0 }
 0x29d   :  { %v1696_v52 = vadd.f32 %v4418_v37, %v1695_v51  ;;  %3646 = vmatprep.mubr.msk.f32.mxu1 %vm107_vm0, %v1996_v47 }
 0x29e   :  { %3647 = vmatmul.mubr.msk.f32.vlgmr.msra.gmra.mrb[64].mxu1 %vm107_vm0, %v1997_v49  ;;  %v1999_v55 = vmax.f32 %v1701_v50, 0.0 }
 0x29f   :  { %v1998_v53 = vmax.f32 %v1696_v52, 0.0  ;;  %v3550_v54 = vpop.f32.mrb[70].mxu0 }
 0x2a0   :  { %v1711_v56 = vadd.f32 %v3550_v54, %v4418_v37  ;;  %v1705_v57 = vpop.f32.mrb[71].mxu0 }
 0x2a1   :  { %v1706_v58 = vadd.f32 %v4418_v37, %v1705_v57  ;;  %3649 = vmatprep.mubr.msk.f32.mxu1 %vm107_vm0, %v1998_v53 }
 0x2a2   :  { %3650 = vmatmul.mubr.msk.f32.gmra.mrb[66].mxu1 %vm107_vm0, %v1999_v55  ;;  %v2001_v61 = vmax.f32 %v1711_v56, 0.0 }
 0x2a3   :  { %v2000_v59 = vmax.f32 %v1706_v58, 0.0  ;;  %v3553_v60 = vpop.f32.mrb[72].mxu0 }
 0x2a4   :  { %v1721_v62 = vadd.f32 %v3553_v60, %v4418_v37  ;;  %v1715_v63 = vpop.f32.mrb[73].mxu0 }
 0x2a5   :  { %v1716_v0 = vadd.f32 %v4418_v37, %v1715_v63  ;;  %3652 = vmatprep.mubr.msk.f32.mxu1 %vm107_vm0, %v2000_v59 }
 0x2a6   :  { %3653 = vmatmul.mubr.msk.f32.gmra.mrb[68].mxu1 %vm107_vm0, %v2001_v61  ;;  %v2003_v3 = vmax.f32 %v1721_v62, 0.0 }
 0x2a7   :  { %v2002_v1 = vmax.f32 %v1716_v0, 0.0  ;;  %v3556_v2 = vpop.f32.mrb[74].mxu0 }
 0x2a8   :  { %v1731_v4 = vadd.f32 %v3556_v2, %v4418_v37  ;;  %v1725_v5 = vpop.f32.mrb[75].mxu0 }
 0x2a9   :  { %v1726_v6 = vadd.f32 %v4418_v37, %v1725_v5  ;;  %3655 = vmatprep.mubr.msk.f32.mxu1 %vm107_vm0, %v2002_v1 }
 0x2aa   :  { %3656 = vmatmul.mubr.msk.f32.gmra.mrb[70].mxu1 %vm107_vm0, %v2003_v3  ;;  %v2005_v9 = vmax.f32 %v1731_v4, 0.0 }
 0x2ab   :  { %v2004_v7 = vmax.f32 %v1726_v6, 0.0  ;;  %v3559_v8 = vpop.f32.mrb[76].mxu0 }
 0x2ac   :  { %v1741_v10 = vadd.f32 %v3559_v8, %v4418_v37  ;;  %v1735_v11 = vpop.f32.mrb[77].mxu0 }
 0x2ad   :  { %v1736_v12 = vadd.f32 %v4418_v37, %v1735_v11  ;;  %3658 = vmatprep.mubr.msk.f32.mxu1 %vm107_vm0, %v2004_v7 }
 0x2ae   :  { %3659 = vmatmul.mubr.msk.f32.gmra.mrb[72].mxu1 %vm107_vm0, %v2005_v9  ;;  %v2007_v15 = vmax.f32 %v1741_v10, 0.0 }
 0x2af   :  { %v2006_v13 = vmax.f32 %v1736_v12, 0.0  ;;  %v3562_v14 = vpop.f32.mrb[78].mxu0 }
 0x2b0   :  { %v1751_v16 = vadd.f32 %v3562_v14, %v4418_v37  ;;  %v1745_v17 = vpop.f32.mrb[79].mxu0 }
 0x2b1   :  { %v1746_v18 = vadd.f32 %v4418_v37, %v1745_v17  ;;  %3661 = vmatprep.mubr.msk.f32.mxu1 %vm107_vm0, %v2006_v13 }
 0x2b2   :  { %3662 = vmatmul.mubr.msk.f32.gmra.mrb[74].mxu1 %vm107_vm0, %v2007_v15  ;;  %v2009_v22 = vmax.f32 %v1751_v16, 0.0 }
 0x2b3   :  { %v2008_v19 = vmax.f32 %v1746_v18, 0.0  ;;  %v3565_v20 = vpop.f32.mrb[80].mxu0 }
 0x2b4   :  { %v1761_v23 = vadd.f32 %v3565_v20, %v4418_v37  ;;  %v1755_v24 = vpop.f32.mrb[81].mxu0 }
 0x2b5   :  { %v1756_v25 = vadd.f32 %v4418_v37, %v1755_v24  ;;  %3664 = vmatprep.mubr.msk.f32.mxu1 %vm107_vm0, %v2008_v19 }
 0x2b6   :  { %3665 = vmatmul.mubr.msk.f32.gmra.mrb[76].mxu1 %vm107_vm0, %v2009_v22  ;;  %v2011_v28 = vmax.f32 %v1761_v23, 0.0 }
 0x2b7   :  { %v2010_v26 = vmax.f32 %v1756_v25, 0.0  ;;  %v3568_v27 = vpop.f32.mrb[82].mxu0 }
 0x2b8   :  { %v1771_v29 = vadd.f32 %v3568_v27, %v4418_v37  ;;  %v1765_v30 = vpop.f32.mrb[83].mxu0 }
 0x2b9   :  { %v1766_v31 = vadd.f32 %v4418_v37, %v1765_v30  ;;  %3667 = vmatprep.mubr.msk.f32.mxu1 %vm107_vm0, %v2010_v26 }
 0x2ba   :  { %3668 = vmatmul.mubr.msk.f32.gmra.mrb[78].mxu1 %vm107_vm0, %v2011_v28  ;;  %v2013_v34 = vmax.f32 %v1771_v29, 0.0 }
 0x2bb   :  { %v2012_v32 = vmax.f32 %v1766_v31, 0.0  ;;  %v3571_v33 = vpop.f32.mrb[84].mxu0 }
 0x2bc   :  { %v1781_v35 = vadd.f32 %v3571_v33, %v4418_v37  ;;  %v1775_v36 = vpop.f32.mrb[85].mxu0 }
 0x2bd   :  { %v1776_v38 = vadd.f32 %v4418_v37, %v1775_v36  ;;  %3670 = vmatprep.mubr.msk.f32.mxu1 %vm107_vm0, %v2012_v32 }
 0x2be   :  { %3671 = vmatmul.mubr.msk.f32.gmra.mrb[80].mxu1 %vm107_vm0, %v2013_v34  ;;  %v2015_v21 = vmax.f32 %v1781_v35, 0.0 }
 0x2bf   :  { %v2014_v39 = vmax.f32 %v1776_v38, 0.0  ;;  %v3574_v40 = vpop.f32.mrb[86].mxu0 }
 0x2c0   :  { %v1791_v41 = vadd.f32 %v3574_v40, %v4418_v37  ;;  %v1785_v42 = vpop.f32.mrb[87].mxu0 }
 0x2c1   :  { %v1786_v43 = vadd.f32 %v4418_v37, %v1785_v42  ;;  %3673 = vmatprep.mubr.msk.f32.mxu1 %vm107_vm0, %v2014_v39 }
 0x2c2   :  { %3674 = vmatmul.mubr.msk.f32.gmra.mrb[82].mxu1 %vm107_vm0, %v2015_v21  ;;  %v2017_v46 = vmax.f32 %v1791_v41, 0.0 }
 0x2c3   :  { %v2016_v44 = vmax.f32 %v1786_v43, 0.0  ;;  %v3577_v45 = vpop.f32.mrb[88].mxu0 }
 0x2c4   :  { %v1801_v47 = vadd.f32 %v3577_v45, %v4418_v37  ;;  %v1795_v48 = vpop.f32.mrb[89].mxu0 }
 0x2c5   :  { %v1796_v49 = vadd.f32 %v4418_v37, %v1795_v48  ;;  %3676 = vmatprep.mubr.msk.f32.mxu1 %vm107_vm0, %v2016_v44 }
 0x2c6   :  { %3677 = vmatmul.mubr.msk.f32.gmra.mrb[84].mxu1 %vm107_vm0, %v2017_v46  ;;  %v2019_v52 = vmax.f32 %v1801_v47, 0.0 }
 0x2c7   :  { %v2018_v50 = vmax.f32 %v1796_v49, 0.0  ;;  %v3580_v51 = vpop.f32.mrb[90].mxu0 }
 0x2c8   :  { %v1811_v53 = vadd.f32 %v3580_v51, %v4418_v37  ;;  %v1805_v54 = vpop.f32.mrb[91].mxu0 }
 0x2c9   :  { %v1806_v55 = vadd.f32 %v4418_v37, %v1805_v54  ;;  %3679 = vmatprep.mubr.msk.f32.mxu1 %vm107_vm0, %v2018_v50 }
 0x2ca   :  { %3680 = vmatmul.mubr.msk.f32.gmra.mrb[86].mxu1 %vm107_vm0, %v2019_v52  ;;  %v2021_v58 = vmax.f32 %v1811_v53, 0.0 }
 0x2cb   :  { %v2020_v56 = vmax.f32 %v1806_v55, 0.0  ;;  %v3583_v57 = vpop.f32.mrb[92].mxu0 }
 0x2cc   :  { %v1821_v59 = vadd.f32 %v3583_v57, %v4418_v37  ;;  %v1815_v60 = vpop.f32.mrb[93].mxu0 }
 0x2cd   :  { %v1816_v61 = vadd.f32 %v4418_v37, %v1815_v60  ;;  %3682 = vmatprep.mubr.msk.f32.mxu1 %vm107_vm0, %v2020_v56 }
 0x2ce   :  { %3683 = vmatmul.mubr.msk.f32.gmra.mrb[88].mxu1 %vm107_vm0, %v2021_v58  ;;  %v2023_v0 = vmax.f32 %v1821_v59, 0.0 }
 0x2cf   :  { %v2022_v62 = vmax.f32 %v1816_v61, 0.0  ;;  %v3586_v63 = vpop.f32.mrb[94].mxu0 }
 0x2d0   :  { %v1831_v1 = vadd.f32 %v3586_v63, %v4418_v37  ;;  %v1825_v2 = vpop.f32.mrb[95].mxu0 }
 0x2d1   :  { %v1826_v3 = vadd.f32 %v4418_v37, %v1825_v2  ;;  %3685 = vmatprep.mubr.msk.f32.mxu1 %vm107_vm0, %v2022_v62 }
 0x2d2   :  { %3686 = vmatmul.mubr.msk.f32.gmra.mrb[90].mxu1 %vm107_vm0, %v2023_v0  ;;  %v2025_v6 = vmax.f32 %v1831_v1, 0.0 }
 0x2d3   :  { %v2024_v4 = vmax.f32 %v1826_v3, 0.0  ;;  %v3589_v5 = vpop.f32.mrb[96].mxu0 }
 0x2d4   :  { %v1841_v7 = vadd.f32 %v3589_v5, %v4418_v37  ;;  %v1835_v8 = vpop.f32.mrb[97].mxu0 }
 0x2d5   :  { %v1836_v9 = vadd.f32 %v4418_v37, %v1835_v8  ;;  %3688 = vmatprep.mubr.msk.f32.mxu1 %vm107_vm0, %v2024_v4 }
 0x2d6   :  { %3689 = vmatmul.mubr.msk.f32.gmra.mrb[92].mxu1 %vm107_vm0, %v2025_v6  ;;  %v2027_v12 = vmax.f32 %v1841_v7, 0.0 }
 0x2d7   :  { %v2026_v10 = vmax.f32 %v1836_v9, 0.0  ;;  %v3592_v11 = vpop.f32.mrb[98].mxu0 }
 0x2d8   :  { %v1851_v13 = vadd.f32 %v3592_v11, %v4418_v37  ;;  %v1845_v14 = vpop.f32.mrb[99].mxu0 }
 0x2d9   :  { %v1846_v15 = vadd.f32 %v4418_v37, %v1845_v14  ;;  %3691 = vmatprep.mubr.msk.f32.mxu1 %vm107_vm0, %v2026_v10 }
 0x2da   :  { %3692 = vmatmul.mubr.msk.f32.gmra.mrb[94].mxu1 %vm107_vm0, %v2027_v12  ;;  %v2029_v18 = vmax.f32 %v1851_v13, 0.0 }
 0x2db   :  { %v2028_v16 = vmax.f32 %v1846_v15, 0.0  ;;  %v3595_v17 = vpop.f32.mrb[100].mxu0 }
 0x2dc   :  { %v1861_v19 = vadd.f32 %v3595_v17, %v4418_v37  ;;  %v1855_v20 = vpop.f32.mrb[101].mxu0 }
 0x2dd   :  { %v1856_v22 = vadd.f32 %v4418_v37, %v1855_v20  ;;  %3694 = vmatprep.mubr.msk.f32.mxu1 %vm107_vm0, %v2028_v16 }
 0x2de   :  { %3695 = vmatmul.mubr.msk.f32.gmra.mrb[96].mxu1 %vm107_vm0, %v2029_v18  ;;  %v2031_v25 = vmax.f32 %v1861_v19, 0.0 }
 0x2df   :  { %v2030_v23 = vmax.f32 %v1856_v22, 0.0  ;;  %v3598_v24 = vpop.f32.mrb[102].mxu0 }
 0x2e0   :  { %v1871_v26 = vadd.f32 %v3598_v24, %v4418_v37  ;;  %v1865_v27 = vpop.f32.mrb[103].mxu0 }
 0x2e1   :  { %v1866_v28 = vadd.f32 %v4418_v37, %v1865_v27  ;;  %3697 = vmatprep.mubr.msk.f32.mxu1 %vm107_vm0, %v2030_v23 }
 0x2e2   :  { %3698 = vmatmul.mubr.msk.f32.gmra.mrb[98].mxu1 %vm107_vm0, %v2031_v25  ;;  %v2033_v31 = vmax.f32 %v1871_v26, 0.0 }
 0x2e3   :  { %v2032_v29 = vmax.f32 %v1866_v28, 0.0  ;;  %v3601_v30 = vpop.f32.mrb[104].mxu0 }
 0x2e4   :  { %v1881_v32 = vadd.f32 %v3601_v30, %v4418_v37  ;;  %v1875_v33 = vpop.f32.mrb[105].mxu0 }
 0x2e5   :  { %v1876_v34 = vadd.f32 %v4418_v37, %v1875_v33  ;;  %3700 = vmatprep.mubr.msk.f32.mxu1 %vm107_vm0, %v2032_v29 }
 0x2e6   :  { %3701 = vmatmul.mubr.msk.f32.gmra.mrb[100].mxu1 %vm107_vm0, %v2033_v31  ;;  %v2035_v38 = vmax.f32 %v1881_v32, 0.0 }
 0x2e7   :  { %v2034_v35 = vmax.f32 %v1876_v34, 0.0  ;;  %v3604_v36 = vpop.f32.mrb[106].mxu0 }
 0x2e8   :  { %v1891_v39 = vadd.f32 %v3604_v36, %v4418_v37  ;;  %v1885_v40 = vpop.f32.mrb[107].mxu0 }
 0x2e9   :  { %v1886_v21 = vadd.f32 %v4418_v37, %v1885_v40  ;;  %3703 = vmatprep.mubr.msk.f32.mxu1 %vm107_vm0, %v2034_v35 }
 0x2ea   :  { %3704 = vmatmul.mubr.msk.f32.gmra.mrb[102].mxu1 %vm107_vm0, %v2035_v38  ;;  %v2037_v43 = vmax.f32 %v1891_v39, 0.0 }
 0x2eb   :  { %v2036_v41 = vmax.f32 %v1886_v21, 0.0  ;;  %v3607_v42 = vpop.f32.mrb[108].mxu0  ;;  %v4551_v21 = vld [vmem:[%s4881_s8] ss:$0 sm:$0xff] }
 0x2ec   :  { %v1901_v44 = vadd.f32 %v3607_v42, %v4418_v37  ;;  %v1895_v45 = vpop.f32.mrb[109].mxu0 }
 0x2ed   :  { %v1896_v46 = vadd.f32 %v4418_v37, %v1895_v45  ;;  %3706 = vmatprep.mubr.msk.f32.mxu1 %vm107_vm0, %v2036_v41 }
 0x2ee   :  { %3707 = vmatmul.mubr.msk.f32.gmra.mrb[104].mxu1 %vm107_vm0, %v2037_v43  ;;  %v2039_v49 = vmax.f32 %v1901_v44, 0.0 }
 0x2ef   :  { %v2038_v47 = vmax.f32 %v1896_v46, 0.0  ;;  %v3610_v48 = vpop.f32.mrb[110].mxu0 }
 0x2f0   :  { %v1911_v50 = vadd.f32 %v3610_v48, %v4418_v37  ;;  %v1905_v51 = vpop.f32.mrb[111].mxu0 }
 0x2f1   :  { %v1906_v52 = vadd.f32 %v4418_v37, %v1905_v51  ;;  %3709 = vmatprep.mubr.msk.f32.mxu1 %vm107_vm0, %v2038_v47 }
 0x2f2   :  { %3710 = vmatmul.mubr.msk.f32.gmra.mrb[106].mxu1 %vm107_vm0, %v2039_v49  ;;  %v2041_v55 = vmax.f32 %v1911_v50, 0.0 }
 0x2f3   :  { %v2040_v53 = vmax.f32 %v1906_v52, 0.0  ;;  %v3613_v54 = vpop.f32.mrb[112].mxu0 }
 0x2f4   :  { %v1921_v56 = vadd.f32 %v3613_v54, %v4418_v37  ;;  %v1915_v57 = vpop.f32.mrb[113].mxu0 }
 0x2f5   :  { %v1916_v58 = vadd.f32 %v4418_v37, %v1915_v57  ;;  %3712 = vmatprep.mubr.msk.f32.mxu1 %vm107_vm0, %v2040_v53 }
 0x2f6   :  { %3713 = vmatmul.mubr.msk.f32.gmra.mrb[108].mxu1 %vm107_vm0, %v2041_v55  ;;  %v2043_v61 = vmax.f32 %v1921_v56, 0.0 }
 0x2f7   :  { %v2042_v59 = vmax.f32 %v1916_v58, 0.0  ;;  %v3616_v60 = vpop.f32.mrb[114].mxu0 }
 0x2f8   :  { %v1931_v62 = vadd.f32 %v3616_v60, %v4418_v37  ;;  %v1925_v63 = vpop.f32.mrb[115].mxu0 }
 0x2f9   :  { %v1926_v0 = vadd.f32 %v4418_v37, %v1925_v63  ;;  %3715 = vmatprep.mubr.msk.f32.mxu1 %vm107_vm0, %v2042_v59 }
 0x2fa   :  { %3716 = vmatmul.mubr.msk.f32.gmra.mrb[110].mxu1 %vm107_vm0, %v2043_v61  ;;  %v2045_v3 = vmax.f32 %v1931_v62, 0.0 }
 0x2fb   :  { %v2044_v1 = vmax.f32 %v1926_v0, 0.0  ;;  %v3619_v2 = vpop.f32.mrb[116].mxu0 }
 0x2fc   :  { %v1941_v4 = vadd.f32 %v3619_v2, %v4418_v37  ;;  %v1935_v5 = vpop.f32.mrb[117].mxu0 }
 0x2fd   :  { %v1936_v6 = vadd.f32 %v4418_v37, %v1935_v5  ;;  %3718 = vmatprep.mubr.msk.f32.mxu1 %vm107_vm0, %v2044_v1 }
 0x2fe   :  { %3719 = vmatmul.mubr.msk.f32.gmra.mrb[112].mxu1 %vm107_vm0, %v2045_v3  ;;  %v2047_v9 = vmax.f32 %v1941_v4, 0.0 }
 0x2ff   :  { %v2046_v7 = vmax.f32 %v1936_v6, 0.0  ;;  %v3622_v8 = vpop.f32.mrb[118].mxu0 }
 0x300   :  { %v1951_v10 = vadd.f32 %v3622_v8, %v4418_v37  ;;  %v1945_v11 = vpop.f32.mrb[119].mxu0 }
 0x301   :  { %v1946_v12 = vadd.f32 %v4418_v37, %v1945_v11  ;;  %3721 = vmatprep.mubr.msk.f32.mxu1 %vm107_vm0, %v2046_v7 }
 0x302   :  { %3722 = vmatmul.mubr.msk.f32.gmra.mrb[114].mxu1 %vm107_vm0, %v2047_v9  ;;  %v2049_v15 = vmax.f32 %v1951_v10, 0.0 }
 0x303   :  { %v2048_v13 = vmax.f32 %v1946_v12, 0.0  ;;  %v3625_v14 = vpop.f32.mrb[120].mxu0 }
 0x304   :  { %v1961_v16 = vadd.f32 %v3625_v14, %v4418_v37  ;;  %v1955_v17 = vpop.f32.mrb[121].mxu0 }
 0x305   :  { %v1956_v18 = vadd.f32 %v4418_v37, %v1955_v17  ;;  %3724 = vmatprep.mubr.msk.f32.mxu1 %vm107_vm0, %v2048_v13 }
 0x306   :  { %3725 = vmatmul.mubr.msk.f32.gmra.mrb[116].mxu1 %vm107_vm0, %v2049_v15  ;;  %v2051_v22 = vmax.f32 %v1961_v16, 0.0 }
 0x307   :  { %v2050_v19 = vmax.f32 %v1956_v18, 0.0  ;;  %v3628_v20 = vpop.f32.mrb[122].mxu0 }
 0x308   :  { %v1971_v23 = vadd.f32 %v3628_v20, %v4418_v37  ;;  %v1965_v24 = vpop.f32.mrb[123].mxu0 }
 0x309   :  { %v1966_v25 = vadd.f32 %v4418_v37, %v1965_v24  ;;  %3727 = vmatprep.mubr.msk.f32.mxu1 %vm107_vm0, %v2050_v19 }
 0x30a   :  { %3728 = vmatmul.mubr.msk.f32.gmra.mrb[118].mxu1 %vm107_vm0, %v2051_v22  ;;  %v2053_v28 = vmax.f32 %v1971_v23, 0.0 }
 0x30b   :  { %v2052_v26 = vmax.f32 %v1966_v25, 0.0  ;;  %v3631_v27 = vpop.f32.mrb[124].mxu0 }
 0x30c   :  { %v1981_v29 = vadd.f32 %v3631_v27, %v4418_v37  ;;  %v1975_v30 = vpop.f32.mrb[125].mxu0 }
 0x30d   :  { %v1976_v31 = vadd.f32 %v4418_v37, %v1975_v30  ;;  %3730 = vmatprep.mubr.msk.f32.mxu1 %vm107_vm0, %v2052_v26 }
 0x30e   :  { %3731 = vmatmul.mubr.msk.f32.gmra.mrb[120].mxu1 %vm107_vm0, %v2053_v28  ;;  %v2055_v34 = vmax.f32 %v1981_v29, 0.0 }
 0x30f   :  { %v2054_v32 = vmax.f32 %v1976_v31, 0.0  ;;  %v3634_v33 = vpop.f32.mrb[126].mxu0 }
 0x310   :  { %v1991_v35 = vadd.f32 %v3634_v33, %v4418_v37  ;;  %v1985_v36 = vpop.f32.mrb[127].mxu0 }
 0x311   :  { %v1986_v38 = vadd.f32 %v4418_v37, %v1985_v36  ;;  %3733 = vmatprep.mubr.msk.f32.mxu1 %vm107_vm0, %v2054_v32 }
 0x312   :  { %3734 = vmatmul.mubr.msk.f32.gmra.mrb[122].mxu1 %vm107_vm0, %v2055_v34  ;;  %v2057_v40 = vmax.f32 %v1991_v35, 0.0 }
 0x313   :  { %v2056_v39 = vmax.f32 %v1986_v38, 0.0 }
 0x315   :  { %3736 = vmatprep.mubr.msk.f32.mxu1 %vm107_vm0, %v2056_v39 }
 0x316   :  { %3737 = vmatmul.mubr.msk.f32.gmra.mrb[124].mxu1 %vm107_vm0, %v2057_v40 }
 0x36d   :  { %v3645_v41 = vpop.f32.mrb[128].mxu0 }
 0x36e   :  { %v2333_v42 = vadd.f32 %v3645_v41, %v4551_v21  ;;  %v2327_v43 = vpop.f32.mrb[129].mxu0 }
 0x36f   :  { %v2328_v37 = vadd.f32 %v4551_v21, %v2327_v43 }
 0x370   :  { %v2647_v44 = vmax.f32 %v2333_v42, 0.0 }
 0x371   :  { %v2646_v45 = vmax.f32 %v2328_v37, 0.0  ;;  %v3648_v46 = vpop.f32.mrb[64].mxu1 }
 0x372   :  { %2712 = vst.msk [vmem:[%s4882_s9 + $0x8] sm:$0xff] %vm2710_vm2, %v2647_v44  ;;  %v2343_v47 = vadd.f32 %v3648_v46, %v4551_v21  ;;  %v2337_v48 = vpop.f32.mrb[65].mxu1 }
 0x373   :  { %2711 = vst.msk [vmem:[%s4882_s9] sm:$0xff] %vm2710_vm2, %v2646_v45  ;;  %v2338_v49 = vadd.f32 %v4551_v21, %v2337_v48 }
 0x374   :  { %v2649_v50 = vmax.f32 %v2343_v47, 0.0 }
 0x375   :  { %v2648_v51 = vmax.f32 %v2338_v49, 0.0  ;;  %v3651_v52 = vpop.f32.mrb[66].mxu1 }
 0x376   :  { %2714 = vst.msk [vmem:[%s4882_s9 + $0x18] sm:$0xff] %vm2710_vm2, %v2649_v50  ;;  %v2353_v53 = vadd.f32 %v3651_v52, %v4551_v21  ;;  %v2347_v54 = vpop.f32.mrb[67].mxu1 }
 0x377   :  { %2713 = vst.msk [vmem:[%s4882_s9 + $0x10] sm:$0xff] %vm2710_vm2, %v2648_v51  ;;  %v2348_v55 = vadd.f32 %v4551_v21, %v2347_v54 }
 0x378   :  { %v2651_v56 = vmax.f32 %v2353_v53, 0.0 }
 0x379   :  { %v2650_v57 = vmax.f32 %v2348_v55, 0.0  ;;  %v3654_v58 = vpop.f32.mrb[68].mxu1 }
 0x37a   :  { %2716 = vst.msk [vmem:[%s4882_s9 + $0x28] sm:$0xff] %vm2710_vm2, %v2651_v56  ;;  %v2363_v59 = vadd.f32 %v3654_v58, %v4551_v21  ;;  %v2357_v60 = vpop.f32.mrb[69].mxu1 }
 0x37b   :  { %2715 = vst.msk [vmem:[%s4882_s9 + $0x20] sm:$0xff] %vm2710_vm2, %v2650_v57  ;;  %v2358_v61 = vadd.f32 %v4551_v21, %v2357_v60 }
 0x37c   :  { %v2653_v62 = vmax.f32 %v2363_v59, 0.0 }
 0x37d   :  { %v2652_v63 = vmax.f32 %v2358_v61, 0.0  ;;  %v3657_v0 = vpop.f32.mrb[70].mxu1 }
 0x37e   :  { %2718 = vst.msk [vmem:[%s4882_s9 + $0x38] sm:$0xff] %vm2710_vm2, %v2653_v62  ;;  %v2373_v1 = vadd.f32 %v3657_v0, %v4551_v21  ;;  %v2367_v2 = vpop.f32.mrb[71].mxu1 }
 0x37f   :  { %2717 = vst.msk [vmem:[%s4882_s9 + $0x30] sm:$0xff] %vm2710_vm2, %v2652_v63  ;;  %v2368_v3 = vadd.f32 %v4551_v21, %v2367_v2 }
 0x380   :  { %v2655_v4 = vmax.f32 %v2373_v1, 0.0 }
 0x381   :  { %v2654_v5 = vmax.f32 %v2368_v3, 0.0  ;;  %v3660_v6 = vpop.f32.mrb[72].mxu1 }
 0x382   :  { %2720 = vst.msk [vmem:[%s4882_s9 + $0x48] sm:$0xff] %vm2710_vm2, %v2655_v4  ;;  %v2383_v7 = vadd.f32 %v3660_v6, %v4551_v21  ;;  %v2377_v8 = vpop.f32.mrb[73].mxu1 }
 0x383   :  { %2719 = vst.msk [vmem:[%s4882_s9 + $0x40] sm:$0xff] %vm2710_vm2, %v2654_v5  ;;  %v2378_v9 = vadd.f32 %v4551_v21, %v2377_v8 }
 0x384   :  { %v2657_v10 = vmax.f32 %v2383_v7, 0.0 }
 0x385   :  { %v2656_v11 = vmax.f32 %v2378_v9, 0.0  ;;  %v3663_v12 = vpop.f32.mrb[74].mxu1 }
 0x386   :  { %2722 = vst.msk [vmem:[%s4882_s9 + $0x58] sm:$0xff] %vm2710_vm2, %v2657_v10  ;;  %v2393_v13 = vadd.f32 %v3663_v12, %v4551_v21  ;;  %v2387_v14 = vpop.f32.mrb[75].mxu1 }
 0x387   :  { %2721 = vst.msk [vmem:[%s4882_s9 + $0x50] sm:$0xff] %vm2710_vm2, %v2656_v11  ;;  %v2388_v15 = vadd.f32 %v4551_v21, %v2387_v14 }
 0x388   :  { %v2659_v16 = vmax.f32 %v2393_v13, 0.0 }
 0x389   :  { %v2658_v17 = vmax.f32 %v2388_v15, 0.0  ;;  %v3666_v18 = vpop.f32.mrb[76].mxu1 }
 0x38a   :  { %2724 = vst.msk [vmem:[%s4882_s9 + $0x68] sm:$0xff] %vm2710_vm2, %v2659_v16  ;;  %v2403_v19 = vadd.f32 %v3666_v18, %v4551_v21  ;;  %v2397_v20 = vpop.f32.mrb[77].mxu1 }
 0x38b   :  { %2723 = vst.msk [vmem:[%s4882_s9 + $0x60] sm:$0xff] %vm2710_vm2, %v2658_v17  ;;  %v2398_v22 = vadd.f32 %v4551_v21, %v2397_v20 }
 0x38c   :  { %v2661_v23 = vmax.f32 %v2403_v19, 0.0 }
 0x38d   :  { %v2660_v24 = vmax.f32 %v2398_v22, 0.0  ;;  %v3669_v25 = vpop.f32.mrb[78].mxu1 }
 0x38e   :  { %2726 = vst.msk [vmem:[%s4882_s9 + $0x78] sm:$0xff] %vm2710_vm2, %v2661_v23  ;;  %v2413_v26 = vadd.f32 %v3669_v25, %v4551_v21  ;;  %v2407_v27 = vpop.f32.mrb[79].mxu1 }
 0x38f   :  { %2725 = vst.msk [vmem:[%s4882_s9 + $0x70] sm:$0xff] %vm2710_vm2, %v2660_v24  ;;  %v2408_v28 = vadd.f32 %v4551_v21, %v2407_v27 }
 0x390   :  { %v2663_v29 = vmax.f32 %v2413_v26, 0.0 }
 0x391   :  { %v2662_v30 = vmax.f32 %v2408_v28, 0.0  ;;  %v3672_v31 = vpop.f32.mrb[80].mxu1 }
 0x392   :  { %2728 = vst.msk [vmem:[%s4882_s9 + $0x88] sm:$0xff] %vm2710_vm2, %v2663_v29  ;;  %v2423_v32 = vadd.f32 %v3672_v31, %v4551_v21  ;;  %v2417_v33 = vpop.f32.mrb[81].mxu1 }
 0x393   :  { %2727 = vst.msk [vmem:[%s4882_s9 + $0x80] sm:$0xff] %vm2710_vm2, %v2662_v30  ;;  %v2418_v34 = vadd.f32 %v4551_v21, %v2417_v33 }
 0x394   :  { %v2665_v35 = vmax.f32 %v2423_v32, 0.0 }
 0x395   :  { %v2664_v36 = vmax.f32 %v2418_v34, 0.0  ;;  %v3675_v38 = vpop.f32.mrb[82].mxu1 }
 0x396   :  { %2730 = vst.msk [vmem:[%s4882_s9 + $0x98] sm:$0xff] %vm2710_vm2, %v2665_v35  ;;  %v2433_v39 = vadd.f32 %v3675_v38, %v4551_v21  ;;  %v2427_v40 = vpop.f32.mrb[83].mxu1 }
 0x397   :  { %2729 = vst.msk [vmem:[%s4882_s9 + $0x90] sm:$0xff] %vm2710_vm2, %v2664_v36  ;;  %v2428_v41 = vadd.f32 %v4551_v21, %v2427_v40 }
 0x398   :  { %v2667_v42 = vmax.f32 %v2433_v39, 0.0 }
 0x399   :  { %v2666_v43 = vmax.f32 %v2428_v41, 0.0  ;;  %v3678_v37 = vpop.f32.mrb[84].mxu1 }
 0x39a   :  { %2732 = vst.msk [vmem:[%s4882_s9 + $0xa8] sm:$0xff] %vm2710_vm2, %v2667_v42  ;;  %v2443_v44 = vadd.f32 %v3678_v37, %v4551_v21  ;;  %v2437_v45 = vpop.f32.mrb[85].mxu1 }
 0x39b   :  { %2731 = vst.msk [vmem:[%s4882_s9 + $0xa0] sm:$0xff] %vm2710_vm2, %v2666_v43  ;;  %v2438_v46 = vadd.f32 %v4551_v21, %v2437_v45 }
 0x39c   :  { %v2669_v47 = vmax.f32 %v2443_v44, 0.0 }
 0x39d   :  { %v2668_v48 = vmax.f32 %v2438_v46, 0.0  ;;  %v3681_v49 = vpop.f32.mrb[86].mxu1 }
 0x39e   :  { %2734 = vst.msk [vmem:[%s4882_s9 + $0xb8] sm:$0xff] %vm2710_vm2, %v2669_v47  ;;  %v2453_v50 = vadd.f32 %v3681_v49, %v4551_v21  ;;  %v2447_v51 = vpop.f32.mrb[87].mxu1 }
 0x39f   :  { %2733 = vst.msk [vmem:[%s4882_s9 + $0xb0] sm:$0xff] %vm2710_vm2, %v2668_v48  ;;  %v2448_v52 = vadd.f32 %v4551_v21, %v2447_v51 }
 0x3a0   :  { %v2671_v53 = vmax.f32 %v2453_v50, 0.0 }
 0x3a1   :  { %v2670_v54 = vmax.f32 %v2448_v52, 0.0  ;;  %v3684_v55 = vpop.f32.mrb[88].mxu1 }
 0x3a2   :  { %2736 = vst.msk [vmem:[%s4882_s9 + $0xc8] sm:$0xff] %vm2710_vm2, %v2671_v53  ;;  %v2463_v56 = vadd.f32 %v3684_v55, %v4551_v21  ;;  %v2457_v57 = vpop.f32.mrb[89].mxu1 }
 0x3a3   :  { %2735 = vst.msk [vmem:[%s4882_s9 + $0xc0] sm:$0xff] %vm2710_vm2, %v2670_v54  ;;  %v2458_v58 = vadd.f32 %v4551_v21, %v2457_v57 }
 0x3a4   :  { %v2673_v59 = vmax.f32 %v2463_v56, 0.0 }
 0x3a5   :  { %v2672_v60 = vmax.f32 %v2458_v58, 0.0  ;;  %v3687_v61 = vpop.f32.mrb[90].mxu1 }
 0x3a6   :  { %2738 = vst.msk [vmem:[%s4882_s9 + $0xd8] sm:$0xff] %vm2710_vm2, %v2673_v59  ;;  %v2473_v62 = vadd.f32 %v3687_v61, %v4551_v21  ;;  %v2467_v63 = vpop.f32.mrb[91].mxu1 }
 0x3a7   :  { %2737 = vst.msk [vmem:[%s4882_s9 + $0xd0] sm:$0xff] %vm2710_vm2, %v2672_v60  ;;  %v2468_v0 = vadd.f32 %v4551_v21, %v2467_v63 }
 0x3a8   :  { %v2675_v1 = vmax.f32 %v2473_v62, 0.0 }
 0x3a9   :  { %v2674_v2 = vmax.f32 %v2468_v0, 0.0  ;;  %v3690_v3 = vpop.f32.mrb[92].mxu1 }
 0x3aa   :  { %2740 = vst.msk [vmem:[%s4882_s9 + $0xe8] sm:$0xff] %vm2710_vm2, %v2675_v1  ;;  %v2483_v4 = vadd.f32 %v3690_v3, %v4551_v21  ;;  %v2477_v5 = vpop.f32.mrb[93].mxu1 }
 0x3ab   :  { %2739 = vst.msk [vmem:[%s4882_s9 + $0xe0] sm:$0xff] %vm2710_vm2, %v2674_v2  ;;  %v2478_v6 = vadd.f32 %v4551_v21, %v2477_v5 }
 0x3ac   :  { %v2677_v7 = vmax.f32 %v2483_v4, 0.0 }
 0x3ad   :  { %v2676_v8 = vmax.f32 %v2478_v6, 0.0  ;;  %v3693_v9 = vpop.f32.mrb[94].mxu1 }
 0x3ae   :  { %2742 = vst.msk [vmem:[%s4882_s9 + $0xf8] sm:$0xff] %vm2710_vm2, %v2677_v7  ;;  %v2493_v10 = vadd.f32 %v3693_v9, %v4551_v21  ;;  %v2487_v11 = vpop.f32.mrb[95].mxu1 }
 0x3af   :  { %2741 = vst.msk [vmem:[%s4882_s9 + $0xf0] sm:$0xff] %vm2710_vm2, %v2676_v8  ;;  %v2488_v12 = vadd.f32 %v4551_v21, %v2487_v11 }
 0x3b0   :  { %v2679_v13 = vmax.f32 %v2493_v10, 0.0 }
 0x3b1   :  { %v2678_v14 = vmax.f32 %v2488_v12, 0.0  ;;  %v3696_v15 = vpop.f32.mrb[96].mxu1 }
 0x3b2   :  { %2744 = vst.msk [vmem:[%s4882_s9 + $0x108] sm:$0xff] %vm2710_vm2, %v2679_v13  ;;  %v2503_v16 = vadd.f32 %v3696_v15, %v4551_v21  ;;  %v2497_v17 = vpop.f32.mrb[97].mxu1 }
 0x3b3   :  { %2743 = vst.msk [vmem:[%s4882_s9 + $0x100] sm:$0xff] %vm2710_vm2, %v2678_v14  ;;  %v2498_v18 = vadd.f32 %v4551_v21, %v2497_v17 }
 0x3b4   :  { %v2681_v19 = vmax.f32 %v2503_v16, 0.0 }
 0x3b5   :  { %v2680_v20 = vmax.f32 %v2498_v18, 0.0  ;;  %v3699_v22 = vpop.f32.mrb[98].mxu1 }
 0x3b6   :  { %2746 = vst.msk [vmem:[%s4882_s9 + $0x118] sm:$0xff] %vm2710_vm2, %v2681_v19  ;;  %v2513_v23 = vadd.f32 %v3699_v22, %v4551_v21  ;;  %v2507_v24 = vpop.f32.mrb[99].mxu1 }
 0x3b7   :  { %2745 = vst.msk [vmem:[%s4882_s9 + $0x110] sm:$0xff] %vm2710_vm2, %v2680_v20  ;;  %v2508_v25 = vadd.f32 %v4551_v21, %v2507_v24 }
 0x3b8   :  { %v2683_v26 = vmax.f32 %v2513_v23, 0.0 }
 0x3b9   :  { %v2682_v27 = vmax.f32 %v2508_v25, 0.0  ;;  %v3702_v28 = vpop.f32.mrb[100].mxu1 }
 0x3ba   :  { %2748 = vst.msk [vmem:[%s4882_s9 + $0x128] sm:$0xff] %vm2710_vm2, %v2683_v26  ;;  %v2523_v29 = vadd.f32 %v3702_v28, %v4551_v21  ;;  %v2517_v30 = vpop.f32.mrb[101].mxu1 }
 0x3bb   :  { %2747 = vst.msk [vmem:[%s4882_s9 + $0x120] sm:$0xff] %vm2710_vm2, %v2682_v27  ;;  %v2518_v31 = vadd.f32 %v4551_v21, %v2517_v30 }
 0x3bc   :  { %v2685_v32 = vmax.f32 %v2523_v29, 0.0 }
 0x3bd   :  { %v2684_v33 = vmax.f32 %v2518_v31, 0.0  ;;  %v3705_v34 = vpop.f32.mrb[102].mxu1 }
 0x3be   :  { %2750 = vst.msk [vmem:[%s4882_s9 + $0x138] sm:$0xff] %vm2710_vm2, %v2685_v32  ;;  %v2533_v35 = vadd.f32 %v3705_v34, %v4551_v21  ;;  %v2527_v36 = vpop.f32.mrb[103].mxu1 }
 0x3bf   :  { %2749 = vst.msk [vmem:[%s4882_s9 + $0x130] sm:$0xff] %vm2710_vm2, %v2684_v33  ;;  %v2528_v38 = vadd.f32 %v4551_v21, %v2527_v36 }
 0x3c0   :  { %v2687_v39 = vmax.f32 %v2533_v35, 0.0 }
 0x3c1   :  { %v2686_v40 = vmax.f32 %v2528_v38, 0.0  ;;  %v3708_v41 = vpop.f32.mrb[104].mxu1 }
 0x3c2   :  { %2752 = vst.msk [vmem:[%s4882_s9 + $0x148] sm:$0xff] %vm2710_vm2, %v2687_v39  ;;  %v2543_v42 = vadd.f32 %v3708_v41, %v4551_v21  ;;  %v2537_v43 = vpop.f32.mrb[105].mxu1 }
 0x3c3   :  { %2751 = vst.msk [vmem:[%s4882_s9 + $0x140] sm:$0xff] %vm2710_vm2, %v2686_v40  ;;  %v2538_v37 = vadd.f32 %v4551_v21, %v2537_v43 }
 0x3c4   :  { %v2689_v44 = vmax.f32 %v2543_v42, 0.0 }
 0x3c5   :  { %v2688_v45 = vmax.f32 %v2538_v37, 0.0  ;;  %v3711_v46 = vpop.f32.mrb[106].mxu1 }
 0x3c6   :  { %2754 = vst.msk [vmem:[%s4882_s9 + $0x158] sm:$0xff] %vm2710_vm2, %v2689_v44  ;;  %v2553_v47 = vadd.f32 %v3711_v46, %v4551_v21  ;;  %v2547_v48 = vpop.f32.mrb[107].mxu1 }
 0x3c7   :  { %2753 = vst.msk [vmem:[%s4882_s9 + $0x150] sm:$0xff] %vm2710_vm2, %v2688_v45  ;;  %v2548_v49 = vadd.f32 %v4551_v21, %v2547_v48 }
 0x3c8   :  { %v2691_v50 = vmax.f32 %v2553_v47, 0.0 }
 0x3c9   :  { %v2690_v51 = vmax.f32 %v2548_v49, 0.0  ;;  %v3714_v52 = vpop.f32.mrb[108].mxu1 }
 0x3ca   :  { %2756 = vst.msk [vmem:[%s4882_s9 + $0x168] sm:$0xff] %vm2710_vm2, %v2691_v50  ;;  %v2563_v53 = vadd.f32 %v3714_v52, %v4551_v21  ;;  %v2557_v54 = vpop.f32.mrb[109].mxu1 }
 0x3cb   :  { %2755 = vst.msk [vmem:[%s4882_s9 + $0x160] sm:$0xff] %vm2710_vm2, %v2690_v51  ;;  %v2558_v55 = vadd.f32 %v4551_v21, %v2557_v54 }
 0x3cc   :  { %v2693_v56 = vmax.f32 %v2563_v53, 0.0 }
 0x3cd   :  { %v2692_v57 = vmax.f32 %v2558_v55, 0.0  ;;  %v3717_v58 = vpop.f32.mrb[110].mxu1 }
 0x3ce   :  { %2758 = vst.msk [vmem:[%s4882_s9 + $0x178] sm:$0xff] %vm2710_vm2, %v2693_v56  ;;  %v2573_v59 = vadd.f32 %v3717_v58, %v4551_v21  ;;  %v2567_v60 = vpop.f32.mrb[111].mxu1 }
 0x3cf   :  { %2757 = vst.msk [vmem:[%s4882_s9 + $0x170] sm:$0xff] %vm2710_vm2, %v2692_v57  ;;  %v2568_v61 = vadd.f32 %v4551_v21, %v2567_v60 }
 0x3d0   :  { %v2695_v62 = vmax.f32 %v2573_v59, 0.0 }
 0x3d1   :  { %v2694_v63 = vmax.f32 %v2568_v61, 0.0  ;;  %v3720_v0 = vpop.f32.mrb[112].mxu1 }
 0x3d2   :  { %2760 = vst.msk [vmem:[%s4882_s9 + $0x188] sm:$0xff] %vm2710_vm2, %v2695_v62  ;;  %v2583_v1 = vadd.f32 %v3720_v0, %v4551_v21  ;;  %v2577_v2 = vpop.f32.mrb[113].mxu1 }
 0x3d3   :  { %2759 = vst.msk [vmem:[%s4882_s9 + $0x180] sm:$0xff] %vm2710_vm2, %v2694_v63  ;;  %v2578_v3 = vadd.f32 %v4551_v21, %v2577_v2 }
 0x3d4   :  { %v2697_v4 = vmax.f32 %v2583_v1, 0.0 }
 0x3d5   :  { %v2696_v5 = vmax.f32 %v2578_v3, 0.0  ;;  %v3723_v6 = vpop.f32.mrb[114].mxu1 }
 0x3d6   :  { %2762 = vst.msk [vmem:[%s4882_s9 + $0x198] sm:$0xff] %vm2710_vm2, %v2697_v4  ;;  %v2593_v7 = vadd.f32 %v3723_v6, %v4551_v21  ;;  %v2587_v8 = vpop.f32.mrb[115].mxu1 }
 0x3d7   :  { %2761 = vst.msk [vmem:[%s4882_s9 + $0x190] sm:$0xff] %vm2710_vm2, %v2696_v5  ;;  %v2588_v9 = vadd.f32 %v4551_v21, %v2587_v8 }
 0x3d8   :  { %v2699_v10 = vmax.f32 %v2593_v7, 0.0 }
 0x3d9   :  { %v2698_v11 = vmax.f32 %v2588_v9, 0.0  ;;  %v3726_v12 = vpop.f32.mrb[116].mxu1 }
 0x3da   :  { %2764 = vst.msk [vmem:[%s4882_s9 + $0x1a8] sm:$0xff] %vm2710_vm2, %v2699_v10  ;;  %v2603_v13 = vadd.f32 %v3726_v12, %v4551_v21  ;;  %v2597_v14 = vpop.f32.mrb[117].mxu1 }
 0x3db   :  { %2763 = vst.msk [vmem:[%s4882_s9 + $0x1a0] sm:$0xff] %vm2710_vm2, %v2698_v11  ;;  %v2598_v15 = vadd.f32 %v4551_v21, %v2597_v14 }
 0x3dc   :  { %v2701_v16 = vmax.f32 %v2603_v13, 0.0 }
 0x3dd   :  { %v2700_v17 = vmax.f32 %v2598_v15, 0.0  ;;  %v3729_v18 = vpop.f32.mrb[118].mxu1 }
 0x3de   :  { %2766 = vst.msk [vmem:[%s4882_s9 + $0x1b8] sm:$0xff] %vm2710_vm2, %v2701_v16  ;;  %v2613_v19 = vadd.f32 %v3729_v18, %v4551_v21  ;;  %v2607_v20 = vpop.f32.mrb[119].mxu1 }
 0x3df   :  { %2765 = vst.msk [vmem:[%s4882_s9 + $0x1b0] sm:$0xff] %vm2710_vm2, %v2700_v17  ;;  %v2608_v22 = vadd.f32 %v4551_v21, %v2607_v20 }
 0x3e0   :  { %v2703_v23 = vmax.f32 %v2613_v19, 0.0 }
 0x3e1   :  { %v2702_v24 = vmax.f32 %v2608_v22, 0.0  ;;  %v3732_v25 = vpop.f32.mrb[120].mxu1 }
 0x3e2   :  { %2768 = vst.msk [vmem:[%s4882_s9 + $0x1c8] sm:$0xff] %vm2710_vm2, %v2703_v23  ;;  %v2623_v26 = vadd.f32 %v3732_v25, %v4551_v21  ;;  %v2617_v27 = vpop.f32.mrb[121].mxu1 }
 0x3e3   :  { %2767 = vst.msk [vmem:[%s4882_s9 + $0x1c0] sm:$0xff] %vm2710_vm2, %v2702_v24  ;;  %v2618_v28 = vadd.f32 %v4551_v21, %v2617_v27 }
 0x3e4   :  { %v2705_v29 = vmax.f32 %v2623_v26, 0.0 }
 0x3e5   :  { %v2704_v30 = vmax.f32 %v2618_v28, 0.0  ;;  %v3735_v31 = vpop.f32.mrb[122].mxu1 }
 0x3e6   :  { %2770 = vst.msk [vmem:[%s4882_s9 + $0x1d8] sm:$0xff] %vm2710_vm2, %v2705_v29  ;;  %v2633_v32 = vadd.f32 %v3735_v31, %v4551_v21  ;;  %v2627_v33 = vpop.f32.mrb[123].mxu1 }
 0x3e7   :  { %2769 = vst.msk [vmem:[%s4882_s9 + $0x1d0] sm:$0xff] %vm2710_vm2, %v2704_v30  ;;  %v2628_v34 = vadd.f32 %v4551_v21, %v2627_v33 }
 0x3e8   :  { %v2707_v35 = vmax.f32 %v2633_v32, 0.0 }
 0x3e9   :  { %v2706_v36 = vmax.f32 %v2628_v34, 0.0  ;;  %v3738_v38 = vpop.f32.mrb[124].mxu1 }
 0x3ea   :  { %2772 = vst.msk [vmem:[%s4882_s9 + $0x1e8] sm:$0xff] %vm2710_vm2, %v2707_v35  ;;  %v2643_v39 = vadd.f32 %v3738_v38, %v4551_v21  ;;  %v2637_v40 = vpop.f32.mrb[125].mxu1 }
 0x3eb   :  { %2771 = vst.msk [vmem:[%s4882_s9 + $0x1e0] sm:$0xff] %vm2710_vm2, %v2706_v36  ;;  %v2638_v41 = vadd.f32 %v4551_v21, %v2637_v40 }
 0x3ec   :  { %v2709_v42 = vmax.f32 %v2643_v39, 0.0 }
 0x3ed   :  { %v2708_v43 = vmax.f32 %v2638_v41, 0.0 }
 0x3ee   :  { %2774 = vst.msk [vmem:[%s4882_s9 + $0x1f8] sm:$0xff] %vm2710_vm2, %v2709_v42 }
 0x3ef   :  { %2773 = vst.msk [vmem:[%s4882_s9 + $0x1f0] sm:$0xff] %vm2710_vm2, %v2708_v43 }

</bundles_post_ra>
